<compile_context>
chip_gen: v5e
topology: v5e:2x2
jax: 0.10.0
libtpu: 0.0.40
codegen_flags: <defaults>
</compile_context>

<pallas_src>
import jax
import jax.numpy as jnp
from jax.experimental import pallas as pl
from jax.experimental.pallas import tpu as pltpu

# Layer sizes of the autoencoder (encoder then decoder).
DIMS = [28 * 28, 128, 64, 12, 3, 12, 64, 128, 28 * 28]
N_LAYERS = len(DIMS) - 1          # 8 linear layers
TANH_LAYER = N_LAYERS - 1         # last layer uses tanh
BOTTLENECK_LAYER = 3              # encoder output (bare Linear, no activation)
D_IN = DIMS[0]                    # 784
D_OUT = DIMS[-1]                  # 784


def _round_up(x, m):
    return ((x + m - 1) // m) * m


def _ae_kernel(x_ref, *refs):
    """Fused forward pass for one batch tile.

    refs = (w0, b0, w1, b1, ..., w7, b7, out_ref)
    x is bf16 (tile_m, 784); weights bf16 (in, out); biases f32 (1, out).
    Matmuls run with bf16 operands and f32 accumulation; bias/activation math
    is f32; result cast to out_ref.dtype on store.
    """
    out_ref = refs[-1]
    param_refs = refs[:-1]

    h = x_ref[...]                                  # (tile_m, 784) bf16
    for layer in range(N_LAYERS):
        w = param_refs[2 * layer][...]              # bf16 (in, out)
        b = param_refs[2 * layer + 1][...]          # f32  (1, out)
        h = jnp.dot(h, w, preferred_element_type=jnp.float32) + b
        if layer == TANH_LAYER:
            h = jnp.tanh(h)
        elif layer == BOTTLENECK_LAYER:
            pass                                     # bare Linear in PyTorch
        else:
            h = jnp.maximum(h, 0.0)
        if layer != N_LAYERS - 1:
            h = h.astype(jnp.bfloat16)               # next MXU operand
    out_ref[...] = h.astype(out_ref.dtype)


def autoencoder_forward(x, params, *, tile_m=512, out_dtype=jnp.bfloat16):
    """x: (B, 784), any float dtype (bf16 preferred -- cast is fused upstream
    ideally).  params: list of (W_t, b), W_t = (in, out), b = (1, out), f32.
    Returns (B, 784) in out_dtype."""
    B, D = x.shape
    assert D == D_IN

    # Feed the kernel bf16 activations (halves input HBM bytes).
    if x.dtype != jnp.bfloat16:
        x = x.astype(jnp.bfloat16)

    # Clamp the batch tile so there are >= 2 grid steps (v7x megacore) while
    # keeping it a multiple of 16 (bf16 sublane packing); large batches keep
    # the full tile_m to amortize ~0.35 us/step overhead.
    tile_m_eff = min(_round_up(tile_m, 16),
                     max(16, _round_up(pl.cdiv(B, 2), 16)))
    grid_m = pl.cdiv(B, tile_m_eff)   # partial last block handled by masking

    # x / out: blocked over the batch dim, full 784 feature dim (lane-dense
    # enough: 6 full lane groups + 1 masked).  Weights/biases: whole-array,
    # grid-invariant VMEM residents (no double buffering).
    in_specs = [pl.BlockSpec((tile_m_eff, D_IN), lambda i: (i, 0))]
    flat_params = []
    for w_t, b in params:
        flat_params.append(w_t.astype(jnp.bfloat16))
        flat_params.append(b.astype(jnp.float32))
        in_specs.append(pl.BlockSpec(memory_space=pltpu.MemorySpace.VMEM))
        in_specs.append(pl.BlockSpec(memory_space=pltpu.MemorySpace.VMEM))

    out_spec = pl.BlockSpec((tile_m_eff, D_OUT), lambda i: (i, 0))

    grid_spec = pltpu.PrefetchScalarGridSpec(
        num_scalar_prefetch=0,
        grid=(grid_m,),
        in_specs=in_specs,
        out_specs=out_spec,
    )

    return pl.pallas_call(
        _ae_kernel,
        out_shape=jax.ShapeDtypeStruct((B, D_OUT), out_dtype),
        grid_spec=grid_spec,
        compiler_params=pltpu.CompilerParams(
            dimension_semantics=("parallel",),
            # Only matters for very large tile_m; default tiles need a few MiB.
            vmem_limit_bytes=64 * 1024 * 1024,
        ),
    )(x, *flat_params)


def init_params(key):
    """Deterministic init matching nn.Linear's default U(-1/sqrt(fan_in), ...).

    Returns list of (W_t, b) with W_t shape (in, out), b shape (1, out), f32.
    """
    params = []
    for layer in range(N_LAYERS):
        fan_in, fan_out = DIMS[layer], DIMS[layer + 1]
        key, kw, kb = jax.random.split(key, 3)
        bound = 1.0 / jnp.sqrt(fan_in)
        w_t = jax.random.uniform(kw, (fan_in, fan_out), jnp.float32,
                                 minval=-bound, maxval=bound)
        b = jax.random.uniform(kb, (1, fan_out), jnp.float32,
                               minval=-bound, maxval=bound)
        params.append((w_t, b))
    return params


def reference_forward(x, params):
    """Pure-JAX f32 reference of the PyTorch forward pass."""
    h = x
    for layer, (w_t, b) in enumerate(params):
        h = h @ w_t + b
        if layer == TANH_LAYER:
            h = jnp.tanh(h)
        elif layer == BOTTLENECK_LAYER:
            pass
        else:
            h = jnp.maximum(h, 0.0)
    return h


if __name__ == "__main__":
    key = jax.random.PRNGKey(0)
    key, kx = jax.random.split(key)

    # Batch deliberately not a multiple of the tile to exercise the
    # partial-last-block path with >1 grid step (200 -> tile 112, grid 2).
    B = 200
    x_f32 = jax.random.uniform(kx, (B, 28 * 28), jnp.float32,
                               minval=-1.0, maxval=1.0)
    x = x_f32.astype(jnp.bfloat16)        # kernel consumes bf16 activations
    params = init_params(key)

    out = autoencoder_forward(x, params)
    out = jax.block_until_ready(out)

    # Reference in f32 on the same (bf16-rounded) input, so the comparison
    # isolates bf16-matmul / bf16-output rounding.
    ref = reference_forward(x.astype(jnp.float32), params)
    assert out.shape == (B, 28 * 28)
    assert out.dtype == jnp.bfloat16
    out_f32 = out.astype(jnp.float32)
    assert jnp.allclose(out_f32, ref, atol=5e-2, rtol=5e-2), \
        float(jnp.max(jnp.abs(out_f32 - ref)))

    print("KERNEL_OK")
</pallas_src>

<mosaic_0001>
module attributes {stable_mosaic.version = 11 : i64} {
  func.func @_ae_kernel(%arg0: i32, %arg1: memref<112x784xbf16, #tpu.memory_space<vmem>>, %arg2: memref<784x128xbf16, #tpu.memory_space<vmem>>, %arg3: memref<1x128xf32, #tpu.memory_space<vmem>>, %arg4: memref<128x64xbf16, #tpu.memory_space<vmem>>, %arg5: memref<1x64xf32, #tpu.memory_space<vmem>>, %arg6: memref<64x12xbf16, #tpu.memory_space<vmem>>, %arg7: memref<1x12xf32, #tpu.memory_space<vmem>>, %arg8: memref<12x3xbf16, #tpu.memory_space<vmem>>, %arg9: memref<1x3xf32, #tpu.memory_space<vmem>>, %arg10: memref<3x12xbf16, #tpu.memory_space<vmem>>, %arg11: memref<1x12xf32, #tpu.memory_space<vmem>>, %arg12: memref<12x64xbf16, #tpu.memory_space<vmem>>, %arg13: memref<1x64xf32, #tpu.memory_space<vmem>>, %arg14: memref<64x128xbf16, #tpu.memory_space<vmem>>, %arg15: memref<1x128xf32, #tpu.memory_space<vmem>>, %arg16: memref<128x784xbf16, #tpu.memory_space<vmem>>, %arg17: memref<1x784xf32, #tpu.memory_space<vmem>>, %arg18: memref<112x784xbf16, #tpu.memory_space<vmem>>) attributes {dimension_semantics = [#tpu.dimension_semantics<parallel>], iteration_bounds = array<i64: 2>, scalar_prefetch = 0 : i64, scratch_operands = 0 : i64, tpu.core_type = #tpu.core_type<tc>, window_params = [{transform_indices = @transform_0, window_bounds = array<i64: 112, 784>}, {pipeline_mode = #tpu.pipeline_mode<synchronous>, transform_indices = @transform_1, window_bounds = array<i64: 784, 128>}, {pipeline_mode = #tpu.pipeline_mode<synchronous>, transform_indices = @transform_2, window_bounds = array<i64: 1, 128>}, {pipeline_mode = #tpu.pipeline_mode<synchronous>, transform_indices = @transform_3, window_bounds = array<i64: 128, 64>}, {pipeline_mode = #tpu.pipeline_mode<synchronous>, transform_indices = @transform_4, window_bounds = array<i64: 1, 64>}, {pipeline_mode = #tpu.pipeline_mode<synchronous>, transform_indices = @transform_5, window_bounds = array<i64: 64, 12>}, {pipeline_mode = #tpu.pipeline_mode<synchronous>, transform_indices = @transform_6, window_bounds = array<i64: 1, 12>}, {pipeline_mode = #tpu.pipeline_mode<synchronous>, transform_indices = @transform_7, window_bounds = array<i64: 12, 3>}, {pipeline_mode = #tpu.pipeline_mode<synchronous>, transform_indices = @transform_8, window_bounds = array<i64: 1, 3>}, {pipeline_mode = #tpu.pipeline_mode<synchronous>, transform_indices = @transform_9, window_bounds = array<i64: 3, 12>}, {pipeline_mode = #tpu.pipeline_mode<synchronous>, transform_indices = @transform_10, window_bounds = array<i64: 1, 12>}, {pipeline_mode = #tpu.pipeline_mode<synchronous>, transform_indices = @transform_11, window_bounds = array<i64: 12, 64>}, {pipeline_mode = #tpu.pipeline_mode<synchronous>, transform_indices = @transform_12, window_bounds = array<i64: 1, 64>}, {pipeline_mode = #tpu.pipeline_mode<synchronous>, transform_indices = @transform_13, window_bounds = array<i64: 64, 128>}, {pipeline_mode = #tpu.pipeline_mode<synchronous>, transform_indices = @transform_14, window_bounds = array<i64: 1, 128>}, {pipeline_mode = #tpu.pipeline_mode<synchronous>, transform_indices = @transform_15, window_bounds = array<i64: 128, 784>}, {pipeline_mode = #tpu.pipeline_mode<synchronous>, transform_indices = @transform_16, window_bounds = array<i64: 1, 784>}, {transform_indices = @transform_17, window_bounds = array<i64: 112, 784>}]} {
    %c0 = arith.constant 0 : index
    %c0_0 = arith.constant 0 : index
    %0 = vector.load %arg1[%c0, %c0_0] : memref<112x784xbf16, #tpu.memory_space<vmem>>, vector<112x784xbf16>
    %c0_1 = arith.constant 0 : index
    %c0_2 = arith.constant 0 : index
    %1 = vector.load %arg2[%c0_1, %c0_2] : memref<784x128xbf16, #tpu.memory_space<vmem>>, vector<784x128xbf16>
    %c0_3 = arith.constant 0 : index
    %c0_4 = arith.constant 0 : index
    %2 = vector.load %arg3[%c0_3, %c0_4] : memref<1x128xf32, #tpu.memory_space<vmem>>, vector<1x128xf32>
    %cst = arith.constant dense<0.000000e+00> : vector<112x128xf32>
    %3 = tpu.matmul %0, %1, %cst {dimension_numbers = #tpu.dot_dimension_numbers<[1], [0], [0], [1], [0, 0, 1, 1], [], []>} : vector<112x784xbf16>, vector<784x128xbf16>, vector<112x128xf32> -> vector<112x128xf32>
    %4 = vector.broadcast %2 : vector<1x128xf32> to vector<112x128xf32>
    %5 = arith.addf %3, %4 : vector<112x128xf32>
    %cst_5 = arith.constant 0.000000e+00 : f32
    %6 = vector.broadcast %cst_5 : f32 to vector<112x128xf32>
    %7 = arith.maximumf %5, %6 : vector<112x128xf32>
    %8 = arith.truncf %7 : vector<112x128xf32> to vector<112x128xbf16>
    %c0_6 = arith.constant 0 : index
    %c0_7 = arith.constant 0 : index
    %9 = vector.load %arg4[%c0_6, %c0_7] : memref<128x64xbf16, #tpu.memory_space<vmem>>, vector<128x64xbf16>
    %c0_8 = arith.constant 0 : index
    %c0_9 = arith.constant 0 : index
    %10 = vector.load %arg5[%c0_8, %c0_9] : memref<1x64xf32, #tpu.memory_space<vmem>>, vector<1x64xf32>
    %cst_10 = arith.constant dense<0.000000e+00> : vector<112x64xf32>
    %11 = tpu.matmul %8, %9, %cst_10 {dimension_numbers = #tpu.dot_dimension_numbers<[1], [0], [0], [1], [0, 0, 1, 1], [], []>} : vector<112x128xbf16>, vector<128x64xbf16>, vector<112x64xf32> -> vector<112x64xf32>
    %12 = vector.broadcast %10 : vector<1x64xf32> to vector<112x64xf32>
    %13 = arith.addf %11, %12 : vector<112x64xf32>
    %cst_11 = arith.constant 0.000000e+00 : f32
    %14 = vector.broadcast %cst_11 : f32 to vector<112x64xf32>
    %15 = arith.maximumf %13, %14 : vector<112x64xf32>
    %16 = arith.truncf %15 : vector<112x64xf32> to vector<112x64xbf16>
    %c0_12 = arith.constant 0 : index
    %c0_13 = arith.constant 0 : index
    %17 = vector.load %arg6[%c0_12, %c0_13] : memref<64x12xbf16, #tpu.memory_space<vmem>>, vector<64x12xbf16>
    %c0_14 = arith.constant 0 : index
    %c0_15 = arith.constant 0 : index
    %18 = vector.load %arg7[%c0_14, %c0_15] : memref<1x12xf32, #tpu.memory_space<vmem>>, vector<1x12xf32>
    %cst_16 = arith.constant dense<0.000000e+00> : vector<112x12xf32>
    %19 = tpu.matmul %16, %17, %cst_16 {dimension_numbers = #tpu.dot_dimension_numbers<[1], [0], [0], [1], [0, 0, 1, 1], [], []>} : vector<112x64xbf16>, vector<64x12xbf16>, vector<112x12xf32> -> vector<112x12xf32>
    %20 = vector.broadcast %18 : vector<1x12xf32> to vector<112x12xf32>
    %21 = arith.addf %19, %20 : vector<112x12xf32>
    %cst_17 = arith.constant 0.000000e+00 : f32
    %22 = vector.broadcast %cst_17 : f32 to vector<112x12xf32>
    %23 = arith.maximumf %21, %22 : vector<112x12xf32>
    %24 = arith.truncf %23 : vector<112x12xf32> to vector<112x12xbf16>
    %c0_18 = arith.constant 0 : index
    %c0_19 = arith.constant 0 : index
    %25 = vector.load %arg8[%c0_18, %c0_19] : memref<12x3xbf16, #tpu.memory_space<vmem>>, vector<12x3xbf16>
    %c0_20 = arith.constant 0 : index
    %c0_21 = arith.constant 0 : index
    %26 = vector.load %arg9[%c0_20, %c0_21] : memref<1x3xf32, #tpu.memory_space<vmem>>, vector<1x3xf32>
    %cst_22 = arith.constant dense<0.000000e+00> : vector<112x3xf32>
    %27 = tpu.matmul %24, %25, %cst_22 {dimension_numbers = #tpu.dot_dimension_numbers<[1], [0], [0], [1], [0, 0, 1, 1], [], []>} : vector<112x12xbf16>, vector<12x3xbf16>, vector<112x3xf32> -> vector<112x3xf32>
    %28 = vector.broadcast %26 : vector<1x3xf32> to vector<112x3xf32>
    %29 = arith.addf %27, %28 : vector<112x3xf32>
    %30 = arith.truncf %29 : vector<112x3xf32> to vector<112x3xbf16>
    %c0_23 = arith.constant 0 : index
    %c0_24 = arith.constant 0 : index
    %31 = vector.load %arg10[%c0_23, %c0_24] : memref<3x12xbf16, #tpu.memory_space<vmem>>, vector<3x12xbf16>
    %c0_25 = arith.constant 0 : index
    %c0_26 = arith.constant 0 : index
    %32 = vector.load %arg11[%c0_25, %c0_26] : memref<1x12xf32, #tpu.memory_space<vmem>>, vector<1x12xf32>
    %cst_27 = arith.constant dense<0.000000e+00> : vector<112x12xf32>
    %33 = tpu.matmul %30, %31, %cst_27 {dimension_numbers = #tpu.dot_dimension_numbers<[1], [0], [0], [1], [0, 0, 1, 1], [], []>} : vector<112x3xbf16>, vector<3x12xbf16>, vector<112x12xf32> -> vector<112x12xf32>
    %34 = vector.broadcast %32 : vector<1x12xf32> to vector<112x12xf32>
    %35 = arith.addf %33, %34 : vector<112x12xf32>
    %cst_28 = arith.constant 0.000000e+00 : f32
    %36 = vector.broadcast %cst_28 : f32 to vector<112x12xf32>
    %37 = arith.maximumf %35, %36 : vector<112x12xf32>
    %38 = arith.truncf %37 : vector<112x12xf32> to vector<112x12xbf16>
    %c0_29 = arith.constant 0 : index
    %c0_30 = arith.constant 0 : index
    %39 = vector.load %arg12[%c0_29, %c0_30] : memref<12x64xbf16, #tpu.memory_space<vmem>>, vector<12x64xbf16>
    %c0_31 = arith.constant 0 : index
    %c0_32 = arith.constant 0 : index
    %40 = vector.load %arg13[%c0_31, %c0_32] : memref<1x64xf32, #tpu.memory_space<vmem>>, vector<1x64xf32>
    %cst_33 = arith.constant dense<0.000000e+00> : vector<112x64xf32>
    %41 = tpu.matmul %38, %39, %cst_33 {dimension_numbers = #tpu.dot_dimension_numbers<[1], [0], [0], [1], [0, 0, 1, 1], [], []>} : vector<112x12xbf16>, vector<12x64xbf16>, vector<112x64xf32> -> vector<112x64xf32>
    %42 = vector.broadcast %40 : vector<1x64xf32> to vector<112x64xf32>
    %43 = arith.addf %41, %42 : vector<112x64xf32>
    %cst_34 = arith.constant 0.000000e+00 : f32
    %44 = vector.broadcast %cst_34 : f32 to vector<112x64xf32>
    %45 = arith.maximumf %43, %44 : vector<112x64xf32>
    %46 = arith.truncf %45 : vector<112x64xf32> to vector<112x64xbf16>
    %c0_35 = arith.constant 0 : index
    %c0_36 = arith.constant 0 : index
    %47 = vector.load %arg14[%c0_35, %c0_36] : memref<64x128xbf16, #tpu.memory_space<vmem>>, vector<64x128xbf16>
    %c0_37 = arith.constant 0 : index
    %c0_38 = arith.constant 0 : index
    %48 = vector.load %arg15[%c0_37, %c0_38] : memref<1x128xf32, #tpu.memory_space<vmem>>, vector<1x128xf32>
    %cst_39 = arith.constant dense<0.000000e+00> : vector<112x128xf32>
    %49 = tpu.matmul %46, %47, %cst_39 {dimension_numbers = #tpu.dot_dimension_numbers<[1], [0], [0], [1], [0, 0, 1, 1], [], []>} : vector<112x64xbf16>, vector<64x128xbf16>, vector<112x128xf32> -> vector<112x128xf32>
    %50 = vector.broadcast %48 : vector<1x128xf32> to vector<112x128xf32>
    %51 = arith.addf %49, %50 : vector<112x128xf32>
    %cst_40 = arith.constant 0.000000e+00 : f32
    %52 = vector.broadcast %cst_40 : f32 to vector<112x128xf32>
    %53 = arith.maximumf %51, %52 : vector<112x128xf32>
    %54 = arith.truncf %53 : vector<112x128xf32> to vector<112x128xbf16>
    %c0_41 = arith.constant 0 : index
    %c0_42 = arith.constant 0 : index
    %55 = vector.load %arg16[%c0_41, %c0_42] : memref<128x784xbf16, #tpu.memory_space<vmem>>, vector<128x784xbf16>
    %c0_43 = arith.constant 0 : index
    %c0_44 = arith.constant 0 : index
    %56 = vector.load %arg17[%c0_43, %c0_44] : memref<1x784xf32, #tpu.memory_space<vmem>>, vector<1x784xf32>
    %cst_45 = arith.constant dense<0.000000e+00> : vector<112x784xf32>
    %57 = tpu.matmul %54, %55, %cst_45 {dimension_numbers = #tpu.dot_dimension_numbers<[1], [0], [0], [1], [0, 0, 1, 1], [], []>} : vector<112x128xbf16>, vector<128x784xbf16>, vector<112x784xf32> -> vector<112x784xf32>
    %58 = vector.broadcast %56 : vector<1x784xf32> to vector<112x784xf32>
    %59 = arith.addf %57, %58 : vector<112x784xf32>
    %60 = math.tanh %59 : vector<112x784xf32>
    %61 = arith.truncf %60 : vector<112x784xf32> to vector<112x784xbf16>
    %c0_46 = arith.constant 0 : index
    %c0_47 = arith.constant 0 : index
    %62 = vector.load %arg18[%c0_46, %c0_47] : memref<112x784xbf16, #tpu.memory_space<vmem>>, vector<112x784xbf16>
    tpu.vector_store %arg18[%c0_46, %c0_47], %61 {strides = array<i32>} : memref<112x784xbf16, #tpu.memory_space<vmem>>, vector<112x784xbf16>,
    return
  }
  func.func @transform_0(%arg0: i32) -> (i32, i32) {
    %c0_i32 = arith.constant 0 : i32
    %c0_i32_0 = arith.constant 0 : i32
    return %arg0, %c0_i32 : i32, i32
  }
  func.func @transform_1(%arg0: i32) -> (i32, i32) {
    %c0_i32 = arith.constant 0 : i32
    %c0_i32_0 = arith.constant 0 : i32
    %c0_i32_1 = arith.constant 0 : i32
    return %c0_i32, %c0_i32_0 : i32, i32
  }
  func.func @transform_2(%arg0: i32) -> (i32, i32) {
    %c0_i32 = arith.constant 0 : i32
    %c0_i32_0 = arith.constant 0 : i32
    %c0_i32_1 = arith.constant 0 : i32
    return %c0_i32, %c0_i32_0 : i32, i32
  }
  func.func @transform_3(%arg0: i32) -> (i32, i32) {
    %c0_i32 = arith.constant 0 : i32
    %c0_i32_0 = arith.constant 0 : i32
    %c0_i32_1 = arith.constant 0 : i32
    return %c0_i32, %c0_i32_0 : i32, i32
  }
  func.func @transform_4(%arg0: i32) -> (i32, i32) {
    %c0_i32 = arith.constant 0 : i32
    %c0_i32_0 = arith.constant 0 : i32
    %c0_i32_1 = arith.constant 0 : i32
    return %c0_i32, %c0_i32_0 : i32, i32
  }
  func.func @transform_5(%arg0: i32) -> (i32, i32) {
    %c0_i32 = arith.constant 0 : i32
    %c0_i32_0 = arith.constant 0 : i32
    %c0_i32_1 = arith.constant 0 : i32
    return %c0_i32, %c0_i32_0 : i32, i32
  }
  func.func @transform_6(%arg0: i32) -> (i32, i32) {
    %c0_i32 = arith.constant 0 : i32
    %c0_i32_0 = arith.constant 0 : i32
    %c0_i32_1 = arith.constant 0 : i32
    return %c0_i32, %c0_i32_0 : i32, i32
  }
  func.func @transform_7(%arg0: i32) -> (i32, i32) {
    %c0_i32 = arith.constant 0 : i32
    %c0_i32_0 = arith.constant 0 : i32
    %c0_i32_1 = arith.constant 0 : i32
    return %c0_i32, %c0_i32_0 : i32, i32
  }
  func.func @transform_8(%arg0: i32) -> (i32, i32) {
    %c0_i32 = arith.constant 0 : i32
    %c0_i32_0 = arith.constant 0 : i32
    %c0_i32_1 = arith.constant 0 : i32
    return %c0_i32, %c0_i32_0 : i32, i32
  }
  func.func @transform_9(%arg0: i32) -> (i32, i32) {
    %c0_i32 = arith.constant 0 : i32
    %c0_i32_0 = arith.constant 0 : i32
    %c0_i32_1 = arith.constant 0 : i32
    return %c0_i32, %c0_i32_0 : i32, i32
  }
  func.func @transform_10(%arg0: i32) -> (i32, i32) {
    %c0_i32 = arith.constant 0 : i32
    %c0_i32_0 = arith.constant 0 : i32
    %c0_i32_1 = arith.constant 0 : i32
    return %c0_i32, %c0_i32_0 : i32, i32
  }
  func.func @transform_11(%arg0: i32) -> (i32, i32) {
    %c0_i32 = arith.constant 0 : i32
    %c0_i32_0 = arith.constant 0 : i32
    %c0_i32_1 = arith.constant 0 : i32
    return %c0_i32, %c0_i32_0 : i32, i32
  }
  func.func @transform_12(%arg0: i32) -> (i32, i32) {
    %c0_i32 = arith.constant 0 : i32
    %c0_i32_0 = arith.constant 0 : i32
    %c0_i32_1 = arith.constant 0 : i32
    return %c0_i32, %c0_i32_0 : i32, i32
  }
  func.func @transform_13(%arg0: i32) -> (i32, i32) {
    %c0_i32 = arith.constant 0 : i32
    %c0_i32_0 = arith.constant 0 : i32
    %c0_i32_1 = arith.constant 0 : i32
    return %c0_i32, %c0_i32_0 : i32, i32
  }
  func.func @transform_14(%arg0: i32) -> (i32, i32) {
    %c0_i32 = arith.constant 0 : i32
    %c0_i32_0 = arith.constant 0 : i32
    %c0_i32_1 = arith.constant 0 : i32
    return %c0_i32, %c0_i32_0 : i32, i32
  }
  func.func @transform_15(%arg0: i32) -> (i32, i32) {
    %c0_i32 = arith.constant 0 : i32
    %c0_i32_0 = arith.constant 0 : i32
    %c0_i32_1 = arith.constant 0 : i32
    return %c0_i32, %c0_i32_0 : i32, i32
  }
  func.func @transform_16(%arg0: i32) -> (i32, i32) {
    %c0_i32 = arith.constant 0 : i32
    %c0_i32_0 = arith.constant 0 : i32
    %c0_i32_1 = arith.constant 0 : i32
    return %c0_i32, %c0_i32_0 : i32, i32
  }
  func.func @transform_17(%arg0: i32) -> (i32, i32) {
    %c0_i32 = arith.constant 0 : i32
    %c0_i32_0 = arith.constant 0 : i32
    return %arg0, %c0_i32 : i32, i32
  }
}

</mosaic_0001>

<bundles_post_ra>
// kernel: tpu_custom_call.1
= control target key start
LH: loop header
LB: loop body
LE: loop exit
PB: predicated region body
PF: predicated region fallthrough
CT: control target
= control target key end

     0   :  { %s5755_s0 = inlined_call_operand.vmem [shape: bf16[200,784], index: 0, kind: input, shape index: {}]   ;;  %s5756_s1 = inlined_call_operand.hbm [shape: bf16[784,128], index: 1, kind: input, shape index: {}]   ;;  %s5757_s2 = inlined_call_operand.vmem [shape: f32[1,128], index: 2, kind: input, shape index: {}]   ;;  %s5758_s3 = inlined_call_operand.vmem [shape: bf16[128,64], index: 3, kind: input, shape index: {}]   ;;  %s5759_s4 = inlined_call_operand.vmem [shape: f32[1,64], index: 4, kind: input, shape index: {}]   ;;  %s5760_s5 = inlined_call_operand.vmem [shape: bf16[64,12], index: 5, kind: input, shape index: {}]   ;;  %s5761_s6 = inlined_call_operand.vmem [shape: f32[1,12], index: 6, kind: input, shape index: {}]   ;;  %s5762_s7 = inlined_call_operand.vmem [shape: bf16[12,3], index: 7, kind: input, shape index: {}]   ;;  %s5763_s8 = inlined_call_operand.vmem [shape: f32[1,3], index: 8, kind: input, shape index: {}]   ;;  %s5764_s9 = inlined_call_operand.vmem [shape: bf16[3,12], index: 9, kind: input, shape index: {}]   ;;  %s5765_s10 = inlined_call_operand.vmem [shape: f32[1,12], index: 10, kind: input, shape index: {}]   ;;  %s5766_s11 = inlined_call_operand.vmem [shape: bf16[12,64], index: 11, kind: input, shape index: {}]   ;;  %s5767_s12 = inlined_call_operand.vmem [shape: f32[1,64], index: 12, kind: input, shape index: {}]   ;;  %s5768_s13 = inlined_call_operand.vmem [shape: bf16[64,128], index: 13, kind: input, shape index: {}]   ;;  %s5769_s14 = inlined_call_operand.vmem [shape: f32[1,128], index: 14, kind: input, shape index: {}]   ;;  %s5770_s15 = inlined_call_operand.vmem [shape: bf16[128,784], index: 15, kind: input, shape index: {}]   ;;  %s5771_s16 = inlined_call_operand.vmem [shape: f32[1,784], index: 16, kind: input, shape index: {}]   ;;  %s5772_s17 = inlined_call_operand.hbm [shape: bf16[200,784], index: 17, kind: output, shape index: {}]  }
   0x1   :  { %5774 = sst [smem:[#allocation10_spill]] %s5755_s0 }
   0x2   :  { %5775 = sst [smem:[#allocation11_spill]] %s5756_s1 }
   0x3   :  { %5776 = sst [smem:[#allocation12_spill]] %s5757_s2 }
   0x4   :  { %5777 = sst [smem:[#allocation13_spill]] %s5758_s3 }
   0x5   :  { %5778 = sst [smem:[#allocation14_spill]] %s5759_s4 }
   0x6   :  { %5779 = sst [smem:[#allocation15_spill]] %s5760_s5 }
   0x7   :  { %5780 = sst [smem:[#allocation16_spill]] %s5761_s6 }
   0x8   :  { %5781 = sst [smem:[#allocation17_spill]] %s5762_s7 }
   0x9   :  { %22 = vsyncpa [#allocation3], 0 }
   0xa   :  { %23 = vsyncpa [#allocation4], 0 }
   0xb   :  { %25 = vsyncpa [#allocation4 + $0x1], 0  ;;  %s4683_s24 = smov 0   ;;  %s4685_s25 = smov 0  }
   0xc   :  { %s4687_s26 = smov 0   ;;  %s4689_s27 = smov 0  }
   0xd LB: > { %5782 = sst [smem:[#allocation8_spill]] %s4580_s26  ;;  %s4704_s28 = sadd.s32 4294967295, %s4584_s27   ;;  %s4584_s27 = sphi %s4689_s27, %s5799_s27   ;;  %s4580_s26 = sphi %s4687_s26, %s5796_s26   ;;  %s4576_s25 = sphi %s4685_s25, %s5798_s25   ;;  %s4572_s24 = sphi %s4683_s24, %s5797_s24  }
   0xe   : > { %s3300_s29 = sadd.s32 4294967294, %s4584_s27   ;;  %s4708_s0 = sadd.s32 1, %s4584_s27  }
   0xf   : > { %s400_s30 = sadd.s32 1, %s4580_s26  ;;  %s397_s18 = ssub.s32 %s4584_s27, %s4708_s0 }
  0x10   : > { %p410_p0 = scmp.ne.s32.totalorder %s4580_s26, %s4576_s25  ;;  %p398_p1 = scmp.eq.s32.totalorder %s397_s18, 0 }
  0x11   : > { %p411_p2 = scmp.eq.s32.totalorder %s4704_s28, 1  ;;  %p416_p3 = scmp.ne.s32.totalorder %s4576_s25, %s4572_s24 }
  0x12   : > { %p417_p4 = scmp.eq.s32.totalorder %s3300_s29, 1  ;;  %p3301_p7 = scmp.ge.s32.totalorder %s4584_s27, 1 }
  0x13   : > { %s4719_s19 = scalar_select %p398_p1, %s4580_s26, %s400_s30  }
  0x14   : > { %p4721_p5 = por %p411_p2, %p410_p0  ;;  %p4725_p6 = por %p417_p4, %p416_p3 }
  0x15   : > { %5783 = sst [smem:[#allocation9_spill]] %s4719_s19  ;;  %p424_p8 = scmp.lt.s32.totalorder %s4584_s27, 3 }
  0x16   : > { %p4232_p9 = scmp.eq.s32.totalorder %s4704_s28, 0  ;;  %s5786_s23 = sld [smem:[#allocation11_spill]] }
  0x17   : > { %p425_p10 = pnand %p3301_p7, %p424_p8  ;;  %s4586_s29 = smov [#allocation2]  }
  0x18   : > { %s437_s30 = sshll.u32 %s4586_s29, 4  ;;  %s4587_s19 = smov 64   ;;  %s438_s30 = int_to_ptr.vmem [resolvable:$true] %s437_s30 }
  0x19   : > { %p4224_p11 = pneg %p425_p10  ;;  %s4588_s26 = smov 4  }
  0x1a   : > { %518 = sbr.rel (%p425_p10) target bundleno = 1577 (0x629), region = 88 }
  0x1b   : > { %p4225_p12 = pnand %p4232_p9, %p4224_p11 }
  0x1c   : > { %s435_s18 = sshll.u32 %s5786_s23, 4  ;;  %s436_s18 = int_to_ptr.hbm [resolvable:$true] %s435_s18 }
  0x1d   : > { %4227 = dma.hbm_to_vmem [thread:$0]  (!%p4225_p12), %s436_s18, 6272, %s438_s30, [#allocation3], %s4587_s19, %s4587_s19, %s4588_s26  }
  0x1f   : > { %4563 = dma.done.wait (%p4232_p9), [#allocation3], 6272  }
  0x20   : > { %4565 = vsyncadd (%p4232_p9), [#allocation3], 4294961024  ;;  %v4100_v0 = vld [vmem:[#allocation2 + $0x38] sm:$0xff]  ;;  %v4099_v4 = vld [vmem:[#allocation2 + $0x30] sm:$0xff]  ;;  %s4742_s26 = smul.u32 14, %s4704_s28  ;;  %s5787_s18 = sld [smem:[#allocation10_spill]] }
  0x21   : > { %v4108_v1 = vld [vmem:[#allocation2 + $0x78] sm:$0xff]  ;;  %1320 = vmatpush.bf16.msra.mxu0 %v4100_v0  ;;  %v4107_v5 = vld [vmem:[#allocation2 + $0x70] sm:$0xff]  ;;  %v4098_v8 = vld [vmem:[#allocation2 + $0x28] sm:$0xff]  ;;  %vm1298_vm0 = vcmask 130048   ;;  %s5788_s3 = sld [smem:[#allocation13_spill]]  ;;  %vm1818_vm1 = vcmask 523264  }
  0x22   : > { %v4116_v2 = vld [vmem:[#allocation2 + $0xb8] sm:$0xff]  ;;  %1364 = vmatpush.bf16.msra.mxu1 %v4108_v1  ;;  %v4115_v6 = vld [vmem:[#allocation2 + $0xb0] sm:$0xff]  ;;  %v4106_v9 = vld [vmem:[#allocation2 + $0x68] sm:$0xff]  ;;  %p583_p13 = scmp.lt.s32.totalorder %s4742_s26, 24  ;;  %s5789_s2 = sld [smem:[#allocation12_spill]]  ;;  %vm1938_vm2 = vcmask 1045504  }
  0x23   : > { %v4124_v3 = vld [vmem:[#allocation2 + $0xf8] sm:$0xff]  ;;  %1408 = vmatpush.bf16.msra.mxu2 %v4116_v2  ;;  %v4123_v7 = vld [vmem:[#allocation2 + $0xf0] sm:$0xff]  ;;  %v4114_v10 = vld [vmem:[#allocation2 + $0xa8] sm:$0xff]  ;;  %s5790_s5 = sld [smem:[#allocation15_spill]]  ;;  %vm1916_vm3 = vcmask 97280   ;;  %vm2020_vm4 = vcmask 1040384  }
  0x24   : > { %1452 = vmatpush.bf16.msra.mxu3 %v4124_v3  ;;  %v4122_v11 = vld [vmem:[#allocation2 + $0xe8] sm:$0xff]  ;;  %v4097_v12 = vld [vmem:[#allocation2 + $0x20] sm:$0xff]  ;;  %v4096_v16 = vld [vmem:[#allocation2 + $0x18] sm:$0xff]  ;;  %s584_s19 = scalar_select %p583_p13, %s4742_s26, 24  ;;  %vm2021_vm5 = vcmask 1041408   ;;  %vm1998_vm6 = vcmask 23552  }
  0x25   : > { %1321 = vmatpush.bf16.msra.mxu0 %v4099_v4  ;;  %v4105_v13 = vld [vmem:[#allocation2 + $0x60] sm:$0xff]  ;;  %v4104_v17 = vld [vmem:[#allocation2 + $0x58] sm:$0xff]  ;;  %v4095_v20 = vld [vmem:[#allocation2 + $0x10] sm:$0xff]  ;;  %s5791_s4 = sld [smem:[#allocation14_spill]]  ;;  %s574_s30 = sand.u32 1, %s4576_s25   ;;  %vm3147_vm7 = vcmask 125952  }
  0x26   : > { %1365 = vmatpush.bf16.msra.mxu1 %v4107_v5  ;;  %v4113_v14 = vld [vmem:[#allocation2 + $0xa0] sm:$0xff]  ;;  %v4112_v18 = vld [vmem:[#allocation2 + $0x98] sm:$0xff]  ;;  %v4103_v21 = vld [vmem:[#allocation2 + $0x50] sm:$0xff]  ;;  %s4217_s21 = smul.u32 28, %s584_s19  ;;  %s5792_s7 = sld [smem:[#allocation17_spill]] }
  0x27   : > { %1409 = vmatpush.bf16.msra.mxu2 %v4115_v6  ;;  %v4121_v15 = vld [vmem:[#allocation2 + $0xe0] sm:$0xff]  ;;  %v4120_v19 = vld [vmem:[#allocation2 + $0xd8] sm:$0xff]  ;;  %v4111_v22 = vld [vmem:[#allocation2 + $0x90] sm:$0xff]  ;;  %s5793_s6 = sld [smem:[#allocation16_spill]]  ;;  %s5697_s22 = scalar_lea.sflag [#allocation4], %s574_s30 }
  0x28   : > { %1453 = vmatpush.bf16.msra.mxu3 %v4123_v7  ;;  %v4119_v23 = vld [vmem:[#allocation2 + $0xd0] sm:$0xff]  ;;  %v4094_v24 = vld [vmem:[#allocation2 + $0x8] sm:$0xff]  ;;  %s4749_s29 = scalar_lea.vmem %s5787_s18, %s4217_s21  ;;  %v4093_v28 = vld [vmem:[#allocation2] sm:$0xff] }
  0x29   : > { %1322 = vmatpush.bf16.msra.mxu0 %v4098_v8  ;;  %v4102_v25 = vld [vmem:[#allocation2 + $0x48] sm:$0xff]  ;;  %v4101_v29 = vld [vmem:[#allocation2 + $0x40] sm:$0xff]  ;;  %v4047_v33 = vld [vmem:[%s4749_s29 + $0x18] sm:$0xf0] }
  0x2a   : > { %1366 = vmatpush.bf16.msra.mxu1 %v4106_v9  ;;  %v4110_v26 = vld [vmem:[#allocation2 + $0x88] sm:$0xff]  ;;  %v4109_v30 = vld [vmem:[#allocation2 + $0x80] sm:$0xff]  ;;  %v4132_v41 = vld [vmem:[#allocation2 + $0x138] sm:$0xff] }
  0x2b   : > { %1410 = vmatpush.bf16.msra.mxu2 %v4114_v10  ;;  %v4118_v27 = vld [vmem:[#allocation2 + $0xc8] sm:$0xff]  ;;  %v4117_v31 = vld [vmem:[#allocation2 + $0xc0] sm:$0xff]  ;;  %v4140_v46 = vld [vmem:[#allocation2 + $0x178] sm:$0xff] }
  0x2c   : > { %1454 = vmatpush.bf16.msra.mxu3 %v4122_v11  ;;  %v3309_v32 = vld [vmem:[%s4749_s29] sm:$0xf]  ;;  %v4044_v34 = vld [vmem:[%s4749_s29 + $0x4] sm:$0xf]  ;;  %v3317_v36 = vld [vmem:[%s4749_s29 + $0x8] sm:$0xf] }
  0x2d   : > { %1323 = vmatpush.bf16.msra.mxu0 %v4097_v12  ;;  %v3311_v35 = vld [vmem:[%s4749_s29 + $0x1c] sm:$0xf0]  ;;  %v4048_v37 = vld [vmem:[%s4749_s29 + $0x20] sm:$0xf0]  ;;  %v4045_v38 = vld [vmem:[%s4749_s29 + $0xc] sm:$0xf]  ;;  %v3310_v42 = vor.u32 %v4047_v33, %v3309_v32 }
  0x2e   : > { %1367 = vmatpush.bf16.msra.mxu1 %v4105_v13  ;;  %v3319_v39 = vld [vmem:[%s4749_s29 + $0x24] sm:$0xf0]  ;;  %v4141_v40 = vld [vmem:[#allocation2 + $0x180] sm:$0xff]  ;;  %v3314_v43 = vor.u32 %v4044_v34, %v3311_v35  ;;  %v3318_v44 = vor.u32 %v4048_v37, %v3317_v36  ;;  %v4131_v47 = vld [vmem:[#allocation2 + $0x130] sm:$0xff] }
  0x2f   : > { %1411 = vmatpush.bf16.msra.mxu2 %v4113_v14  ;;  %v3322_v45 = vor.u32 %v4045_v38, %v3319_v39  ;;  %v4139_v48 = vld [vmem:[#allocation2 + $0x170] sm:$0xff]  ;;  %v4130_v49 = vld [vmem:[#allocation2 + $0x128] sm:$0xff]  ;;  %v4129_v51 = vld [vmem:[#allocation2 + $0x120] sm:$0xff] }
  0x30   : > { %1455 = vmatpush.bf16.msra.mxu3 %v4121_v15  ;;  %v4138_v50 = vld [vmem:[#allocation2 + $0x168] sm:$0xff]  ;;  %v3337_v52 = vld [vmem:[%s4749_s29 + $0x38] sm:$0xf]  ;;  %v4054_v53 = vld [vmem:[%s4749_s29 + $0x50] sm:$0xf0] }
  0x31   : > { %1324 = vmatpush.bf16.msra.mxu0 %v4096_v16  ;;  %v4051_v54 = vld [vmem:[%s4749_s29 + $0x3c] sm:$0xf]  ;;  %v3339_v55 = vld [vmem:[%s4749_s29 + $0x54] sm:$0xf0]  ;;  %v3345_v56 = vld [vmem:[%s4749_s29 + $0x40] sm:$0xf]  ;;  %v3338_v61 = vor.u32 %v4054_v53, %v3337_v52 }
  0x32   : > { %1368 = vmatpush.bf16.msra.mxu1 %v4104_v17  ;;  %v4055_v57 = vld [vmem:[%s4749_s29 + $0x58] sm:$0xf0]  ;;  %v4052_v58 = vld [vmem:[%s4749_s29 + $0x44] sm:$0xf]  ;;  %v3347_v59 = vld [vmem:[%s4749_s29 + $0x5c] sm:$0xf0]  ;;  %v3342_v62 = vor.u32 %v4051_v54, %v3339_v55 }
  0x33   : > { %1412 = vmatpush.bf16.msra.mxu2 %v4112_v18  ;;  %v4137_v60 = vld [vmem:[#allocation2 + $0x160] sm:$0xff]  ;;  %v3346_v63 = vor.u32 %v4055_v57, %v3345_v56  ;;  %v3350_v0 = vor.u32 %v4052_v58, %v3347_v59  ;;  %v4128_v1 = vld [vmem:[#allocation2 + $0x118] sm:$0xff]  ;;  %v3365_v3 = vld [vmem:[%s4749_s29 + $0x70] sm:$0xf] }
  0x34   : > { %1456 = vmatpush.bf16.msra.mxu3 %v4120_v19  ;;  %v4136_v2 = vld [vmem:[#allocation2 + $0x158] sm:$0xff]  ;;  %v4061_v4 = vld [vmem:[%s4749_s29 + $0x88] sm:$0xf0]  ;;  %v4058_v5 = vld [vmem:[%s4749_s29 + $0x74] sm:$0xf] }
  0x35   : > { %1325 = vmatpush.bf16.msra.mxu0 %v4095_v20  ;;  %v3367_v6 = vld [vmem:[%s4749_s29 + $0x8c] sm:$0xf0]  ;;  %v3373_v7 = vld [vmem:[%s4749_s29 + $0x78] sm:$0xf]  ;;  %v4062_v8 = vld [vmem:[%s4749_s29 + $0x90] sm:$0xf0]  ;;  %v3366_v11 = vor.u32 %v4061_v4, %v3365_v3 }
  0x36   : > { %1369 = vmatpush.bf16.msra.mxu1 %v4103_v21  ;;  %v4059_v9 = vld [vmem:[%s4749_s29 + $0x7c] sm:$0xf]  ;;  %v3375_v10 = vld [vmem:[%s4749_s29 + $0x94] sm:$0xf0]  ;;  %v3370_v12 = vor.u32 %v4058_v5, %v3367_v6  ;;  %v3374_v13 = vor.u32 %v4062_v8, %v3373_v7  ;;  %v4127_v15 = vld [vmem:[#allocation2 + $0x110] sm:$0xff] }
  0x37   : > { %1413 = vmatpush.bf16.msra.mxu2 %v4111_v22  ;;  %v3378_v14 = vor.u32 %v4059_v9, %v3375_v10  ;;  %v4135_v16 = vld [vmem:[#allocation2 + $0x150] sm:$0xff]  ;;  %v3393_v17 = vld [vmem:[%s4749_s29 + $0xa8] sm:$0xf]  ;;  %v4068_v18 = vld [vmem:[%s4749_s29 + $0xc0] sm:$0xf0] }
  0x38   : > { %1457 = vmatpush.bf16.msra.mxu3 %v4119_v23  ;;  %v4065_v19 = vld [vmem:[%s4749_s29 + $0xac] sm:$0xf]  ;;  %v3395_v20 = vld [vmem:[%s4749_s29 + $0xc4] sm:$0xf0]  ;;  %v3401_v21 = vld [vmem:[%s4749_s29 + $0xb0] sm:$0xf] }
  0x39   : > { %1326 = vmatpush.bf16.msra.mxu0 %v4094_v24  ;;  %v4069_v22 = vld [vmem:[%s4749_s29 + $0xc8] sm:$0xf0]  ;;  %v4066_v23 = vld [vmem:[%s4749_s29 + $0xb4] sm:$0xf]  ;;  %v3403_v24 = vld [vmem:[%s4749_s29 + $0xcc] sm:$0xf0] }
  0x3a   : > { %1370 = vmatpush.bf16.msra.mxu1 %v4102_v25  ;;  %v3394_v25 = vor.u32 %v4068_v18, %v3393_v17  ;;  %v4075_v32 = vld [vmem:[%s4749_s29 + $0xf8] sm:$0xf0]  ;;  %v4072_v33 = vld [vmem:[%s4749_s29 + $0xe4] sm:$0xf]  ;;  %v3423_v34 = vld [vmem:[%s4749_s29 + $0xfc] sm:$0xf0] }
  0x3b   : > { %1414 = vmatpush.bf16.msra.mxu2 %v4110_v26  ;;  %v3398_v26 = vor.u32 %v4065_v19, %v3395_v20  ;;  %v3429_v35 = vld [vmem:[%s4749_s29 + $0xe8] sm:$0xf]  ;;  %v4076_v36 = vld [vmem:[%s4749_s29 + $0x100] sm:$0xf0]  ;;  %v4073_v37 = vld [vmem:[%s4749_s29 + $0xec] sm:$0xf] }
  0x3c   : > { %1458 = vmatpush.bf16.msra.mxu3 %v4118_v27  ;;  %v3402_v27 = vor.u32 %v4069_v22, %v3401_v21  ;;  %v3431_v38 = vld [vmem:[%s4749_s29 + $0x104] sm:$0xf0]  ;;  %v3459_v52 = vld [vmem:[%s4749_s29 + $0x13c] sm:$0xf0]  ;;  %v3477_v57 = vld [vmem:[%s4749_s29 + $0x150] sm:$0xf] }
  0x3d   : > { %1327 = vmatpush.bf16.msra.mxu0 %v4093_v28  ;;  %v3406_v28 = vor.u32 %v4066_v23, %v3403_v24  ;;  %v4089_v58 = vld [vmem:[%s4749_s29 + $0x168] sm:$0xf0]  ;;  %v4086_v59 = vld [vmem:[%s4749_s29 + $0x154] sm:$0xf]  ;;  %v3325_v5 = vld [vmem:[%s4749_s29 + $0x10] sm:$0xf] }
  0x3e   : > { %1371 = vmatpush.bf16.msra.mxu1 %v4101_v29  ;;  %v4126_v29 = vld [vmem:[#allocation2 + $0x108] sm:$0xff]  ;;  %v4046_v7 = vld [vmem:[%s4749_s29 + $0x14] sm:$0xf]  ;;  %v3327_v8 = vld [vmem:[%s4749_s29 + $0x2c] sm:$0xf0] }
  0x3f   : > { %1415 = vmatpush.bf16.msra.mxu2 %v4109_v30  ;;  %v4134_v30 = vld [vmem:[#allocation2 + $0x148] sm:$0xff]  ;;  %v3333_v9 = vld [vmem:[%s4749_s29 + $0x18] sm:$0xf]  ;;  %v4050_v10 = vld [vmem:[%s4749_s29 + $0x30] sm:$0xf0] }
  0x40   : > { %1459 = vmatpush.bf16.msra.mxu3 %v4117_v31  ;;  %1328 = vmatmul.bf16.vlgmr.msra.gmra.mxu0 %v3310_v42  ;;  %v3421_v31 = vld [vmem:[%s4749_s29 + $0xe0] sm:$0xf]  ;;  %v3434_v42 = vor.u32 %v4073_v37, %v3431_v38  ;;  %v4049_v6 = vld [vmem:[%s4749_s29 + $0x28] sm:$0xf0]  ;;  %v3355_v18 = vld [vmem:[%s4749_s29 + $0x64] sm:$0xf0] }
  0x41   : > { %1496 = vmatpush.bf16.msrb.mxu0 %v4132_v41  ;;  %1372 = vmatmul.bf16.vlgmr.msra.gmra.mxu1 %v3314_v43  ;;  %v3422_v39 = vor.u32 %v4075_v32, %v3421_v31  ;;  %v3430_v41 = vor.u32 %v4076_v36, %v3429_v35  ;;  %v4125_v43 = vld [vmem:[#allocation2 + $0x100] sm:$0xff]  ;;  %v4053_v17 = vld [vmem:[%s4749_s29 + $0x4c] sm:$0xf]  ;;  %v3361_v20 = vld [vmem:[%s4749_s29 + $0x50] sm:$0xf] }
  0x42   : > { %1416 = vmatmul.bf16.vlgmr.msra.gmra.mxu2 %v3318_v44  ;;  %1540 = vmatpush.bf16.msrb.mxu1 %v4140_v46  ;;  %v4133_v44 = vld [vmem:[#allocation2 + $0x140] sm:$0xff]  ;;  %v4082_v46 = vld [vmem:[%s4749_s29 + $0x130] sm:$0xf0]  ;;  %v4057_v21 = vld [vmem:[%s4749_s29 + $0x68] sm:$0xf0]  ;;  %v3358_v23 = vor.u32 %v4053_v17, %v3355_v18 }
  0x43   : > { %1591 = vmatpush.bf16.msrb.mxu2 %v4141_v40  ;;  %1460 = vmatmul.bf16.vlgmr.msra.gmra.mxu3 %v3322_v45  ;;  %v3426_v40 = vor.u32 %v4072_v33, %v3423_v34  ;;  %v3449_v45 = vld [vmem:[%s4749_s29 + $0x118] sm:$0xf]  ;;  %v4824_v19 = vld [vmem:[%s5789_s2] ss:$0 sm:$0xff]  ;;  %v4063_v37 = vld [vmem:[%s4749_s29 + $0x98] sm:$0xf0] }
  0x44   : > { %v3450_v53 = vor.u32 %v4082_v46, %v3449_v45  ;;  %v3381_v36 = vld [vmem:[%s4749_s29 + $0x80] sm:$0xf]  ;;  %v4060_v38 = vld [vmem:[%s4749_s29 + $0x84] sm:$0xf]  ;;  %v4074_v17 = vld [vmem:[%s4749_s29 + $0xf4] sm:$0xf] }
  0x45   : > { %1497 = vmatpush.bf16.msrb.mxu0 %v4131_v47  ;;  %v4079_v47 = vld [vmem:[%s4749_s29 + $0x11c] sm:$0xf]  ;;  %v3439_v18 = vld [vmem:[%s4749_s29 + $0x10c] sm:$0xf0]  ;;  %s3210_s2 = ssub.s32 (%p4721_p5), 25, %s4742_s26 }
  0x46   : > { %1541 = vmatpush.bf16.msrb.mxu1 %v4139_v48  ;;  %v3451_v48 = vld [vmem:[%s4749_s29 + $0x134] sm:$0xf0]  ;;  %p3211_p0 = scmp.lt.s32.totalorder (%p4721_p5), %s3210_s2, 14 }
  0x47   : > { %v3454_v54 = vor.u32 %v4079_v47, %v3451_v48 }
  0x49   : > { %1498 = vmatpush.bf16.msrb.mxu0 %v4130_v49  ;;  %v3457_v49 = vld [vmem:[%s4749_s29 + $0x120] sm:$0xf] }
  0x4a   : > { %1542 = vmatpush.bf16.msrb.mxu1 %v4138_v50  ;;  %v4083_v50 = vld [vmem:[%s4749_s29 + $0x138] sm:$0xf0] }
  0x4b   : > { %v3458_v55 = vor.u32 %v4083_v50, %v3457_v49 }
  0x4d   : > { %1499 = vmatpush.bf16.msrb.mxu0 %v4129_v51  ;;  %v4080_v51 = vld [vmem:[%s4749_s29 + $0x124] sm:$0xf] }
  0x4e   : > { %1543 = vmatpush.bf16.msrb.mxu1 %v4137_v60  ;;  %v3462_v56 = vor.u32 %v4080_v51, %v3459_v52  ;;  %v3479_v60 = vld [vmem:[%s4749_s29 + $0x16c] sm:$0xf0]  ;;  %v4147_v51 = vld [vmem:[%s5788_s3 + $0x28] sm:$0xff] }
  0x50   : > { %1333 = vmatmul.bf16.gmra.mxu0 %v3338_v61  ;;  %v3485_v61 = vld [vmem:[%s4749_s29 + $0x158] sm:$0xf] }
  0x51   : > { %1377 = vmatmul.bf16.gmra.mxu1 %v3342_v62  ;;  %1500 = vmatpush.bf16.msrb.mxu0 %v4128_v1  ;;  %v4090_v62 = vld [vmem:[%s4749_s29 + $0x170] sm:$0xf0]  ;;  %v3478_v1 = vor.u32 %v4089_v58, %v3477_v57  ;;  %v3409_v58 = vld [vmem:[%s4749_s29 + $0xb8] sm:$0xf] }
  0x52   : > { %1421 = vmatmul.bf16.gmra.mxu2 %v3346_v63  ;;  %1544 = vmatpush.bf16.msrb.mxu1 %v4136_v2  ;;  %v4087_v63 = vld [vmem:[%s4749_s29 + $0x15c] sm:$0xf]  ;;  %v3482_v2 = vor.u32 %v4086_v59, %v3479_v60  ;;  %v3486_v3 = vor.u32 %v4090_v62, %v3485_v61  ;;  %v4070_v59 = vld [vmem:[%s4749_s29 + $0xd0] sm:$0xf0]  ;;  %v3411_v61 = vld [vmem:[%s4749_s29 + $0xd4] sm:$0xf0] }
  0x53   : > { %1465 = vmatmul.bf16.gmra.mxu3 %v3350_v0  ;;  %v3487_v0 = vld [vmem:[%s4749_s29 + $0x174] sm:$0xf0]  ;;  %v4067_v60 = vld [vmem:[%s4749_s29 + $0xbc] sm:$0xf]  ;;  %v3417_v62 = vld [vmem:[%s4749_s29 + $0xc0] sm:$0xf] }
  0x54   : > { %v3490_v4 = vor.u32 %v4087_v63, %v3487_v0  ;;  %v4071_v63 = vld [vmem:[%s4749_s29 + $0xd8] sm:$0xf0] }
  0x55   : > { %1501 = vmatpush.bf16.msrb.mxu0 %v4127_v15  ;;  %v3353_v15 = vld [vmem:[%s4749_s29 + $0x48] sm:$0xf] }
  0x56   : > { %1545 = vmatpush.bf16.msrb.mxu1 %v4135_v16  ;;  %v4056_v16 = vld [vmem:[%s4749_s29 + $0x60] sm:$0xf0] }
  0x57   : > { %v3354_v22 = vor.u32 %v4056_v16, %v3353_v15  ;;  %v4145_v15 = vld [vmem:[%s5788_s3 + $0x18] sm:$0xff]  ;;  %v4077_v16 = vld [vmem:[%s4749_s29 + $0x108] sm:$0xf0] }
  0x59   : > { %1502 = vmatpush.bf16.msrb.mxu0 %v4126_v29  ;;  %v4148_v29 = vld [vmem:[%s5788_s3 + $0x30] sm:$0xff] }
  0x5a   : > { %1546 = vmatpush.bf16.msrb.mxu1 %v4134_v30 }
  0x5d   : > { %1503 = vmatpush.bf16.msrb.mxu0 %v4125_v43  ;;  %v3382_v43 = vor.u32 %v4063_v37, %v3381_v36  ;;  %v4144_v36 = vld [vmem:[%s5788_s3 + $0x10] sm:$0xff]  ;;  %v4084_v37 = vld [vmem:[%s4749_s29 + $0x140] sm:$0xf0] }
  0x5e   : > { %1547 = vmatpush.bf16.msrb.mxu1 %v4133_v44 }
  0x60   : > { %1338 = vmatmul.bf16.gmra.mxu0 %v3366_v11  ;;  %v3326_v11 = vor.u32 %v4049_v6, %v3325_v5  ;;  %v3418_v6 = vor.u32 %v4071_v63, %v3417_v62  ;;  %v4092_v62 = vld [vmem:[%s4749_s29 + $0x180] sm:$0xf0] }
  0x61   : > { %1382 = vmatmul.bf16.gmra.mxu1 %v3370_v12  ;;  %v3330_v12 = vor.u32 %v4046_v7, %v3327_v8  ;;  %v4146_v7 = vld [vmem:[%s5788_s3 + $0x20] sm:$0xff] }
  0x62   : > { %1426 = vmatmul.bf16.gmra.mxu2 %v3374_v13  ;;  %v3334_v13 = vor.u32 %v4050_v10, %v3333_v9 }
  0x63   : > { %1470 = vmatmul.bf16.gmra.mxu3 %v3378_v14  ;;  %v4149_v14 = vld [vmem:[%s5788_s3 + $0x38] sm:$0xff] }
  0x64   : > { %1717 = vmatpush.bf16.msrb.mxu3 %v4149_v14  ;;  %v3437_v14 = vld [vmem:[%s4749_s29 + $0xf0] sm:$0xf] }
  0x68   : > { %1718 = vmatpush.bf16.msrb.mxu3 %v4148_v29 }
  0x6c   : > { %1719 = vmatpush.bf16.msrb.mxu3 %v4147_v51 }
  0x70   : > { %1343 = vmatmul.bf16.gmra.mxu0 %v3394_v25  ;;  %1720 = vmatpush.bf16.msrb.mxu3 %v4146_v7 }
  0x71   : > { %1387 = vmatmul.bf16.gmra.mxu1 %v3398_v26  ;;  %v3362_v26 = vor.u32 %v4057_v21, %v3361_v20  ;;  %v3445_v20 = vld [vmem:[%s4749_s29 + $0xf8] sm:$0xf]  ;;  %v4078_v21 = vld [vmem:[%s4749_s29 + $0x110] sm:$0xf0] }
  0x72   : > { %1431 = vmatmul.bf16.gmra.mxu2 %v3402_v27 }
  0x73   : > { %1475 = vmatmul.bf16.gmra.mxu3 %v3406_v28 }
  0x74   : > { %1721 = vmatpush.bf16.msrb.mxu3 %v4145_v15 }
  0x78   : > { %1722 = vmatpush.bf16.msrb.mxu3 %v4144_v36 }
  0x80   : > { %1348 = vmatmul.bf16.gmra.mxu0 %v3422_v39  ;;  %v3383_v39 = vld [vmem:[%s4749_s29 + $0x9c] sm:$0xf0] }
  0x81   : > { %1392 = vmatmul.bf16.gmra.mxu1 %v3426_v40  ;;  %v3389_v40 = vld [vmem:[%s4749_s29 + $0x88] sm:$0xf]  ;;  %v3386_v44 = vor.u32 %v4060_v38, %v3383_v39  ;;  %v4081_v38 = vld [vmem:[%s4749_s29 + $0x12c] sm:$0xf] }
  0x82   : > { %1436 = vmatmul.bf16.gmra.mxu2 %v3430_v41  ;;  %v4064_v41 = vld [vmem:[%s4749_s29 + $0xa0] sm:$0xf0]  ;;  %v3467_v39 = vld [vmem:[%s4749_s29 + $0x144] sm:$0xf0] }
  0x83   : > { %1480 = vmatmul.bf16.gmra.mxu3 %v3434_v42  ;;  %v3390_v48 = vor.u32 %v4064_v41, %v3389_v40  ;;  %v3473_v40 = vld [vmem:[%s4749_s29 + $0x130] sm:$0xf]  ;;  %v4085_v41 = vld [vmem:[%s4749_s29 + $0x148] sm:$0xf0] }
  0x90   : > { %1353 = vmatmul.bf16.gmra.mxu0 %v3450_v53 }
  0x91   : > { %1397 = vmatmul.bf16.gmra.mxu1 %v3454_v54 }
  0x92   : > { %1441 = vmatmul.bf16.gmra.mxu2 %v3458_v55 }
  0x93   : > { %1485 = vmatmul.bf16.gmra.mxu3 %v3462_v56 }
  0xa0   : > { %1358 = vmatmul.bf16.gmra.mxu0 %v3478_v1  ;;  %v3410_v1 = vor.u32 %v4070_v59, %v3409_v58  ;;  %v4091_v58 = vld [vmem:[%s4749_s29 + $0x178] sm:$0xf0]  ;;  %v4088_v59 = vld [vmem:[%s4749_s29 + $0x164] sm:$0xf] }
  0xa1   : > { %1402 = vmatmul.bf16.gmra.mxu1 %v3482_v2  ;;  %v3414_v2 = vor.u32 %v4067_v60, %v3411_v61  ;;  %v3495_v60 = vld [vmem:[%s4749_s29 + $0x17c] sm:$0xf0]  ;;  %v3501_v61 = vld [vmem:[%s4749_s29 + $0x168] sm:$0xf] }
  0xa2   : > { %1446 = vmatmul.bf16.gmra.mxu2 %v3486_v3 }
  0xa3   : > { %1490 = vmatmul.bf16.gmra.mxu3 %v3490_v4 }
  0xb0   : > { %1504 = vmatmul.bf16.vlgmr.msrb.gmra.mxu0 %v3326_v11 }
  0xb1   : > { %1548 = vmatmul.bf16.vlgmr.msrb.gmra.mxu1 %v3330_v12 }
  0xb2   : > { %3699 = vmatmul.msk.bf16.vlgmr.msrb.gmra.mxu2 %vm1298_vm0, %v3334_v13 }
  0xbd   : > { %v1329_v24 = vpop.f32.mrf.mxu0 }
  0xbe   : > { %v1373_v25 = vpop.f32.mrf.mxu1  ;;  %v1330_v27 = vadd.f32 %v4824_v19, %v1329_v24  ;;  %v3442_v24 = vor.u32 %v4074_v17, %v3439_v18 }
  0xc0   : > { %v1374_v28 = vadd.f32 %v1373_v25, %v1330_v27  ;;  %1509 = vmatmul.bf16.gmra.mxu0 %v3354_v22  ;;  %v3446_v27 = vor.u32 %v4078_v21, %v3445_v20 }
  0xc1   : > { %1553 = vmatmul.bf16.gmra.mxu1 %v3358_v23  ;;  %v3438_v23 = vor.u32 %v4077_v16, %v3437_v14  ;;  %v4142_v16 = vld [vmem:[%s5788_s3] sm:$0xff] }
  0xc2   : > { %3700 = vmatmul.msk.bf16.gmra.mxu2 %vm1298_vm0, %v3362_v26 }
  0xc5   : > { %v1417_v30 = vpop.f32.mrf.mxu2  ;;  %v1331_v32 = vpop.f32.mrf.mxu0 }
  0xc6   : > { %v4833_v31 = vadd.f32 %v1417_v30, %v1374_v28  ;;  %v1375_v33 = vpop.f32.mrf.mxu1  ;;  %v1332_v34 = vadd.f32 %v4824_v19, %v1331_v32  ;;  %v1461_v7 = vpop.f32.mrf.mxu3 }
  0xc8   : > { %v1376_v35 = vadd.f32 %v1375_v33, %v1332_v34 }
  0xcd   : > { %v1419_v42 = vpop.f32.mrf.mxu2  ;;  %v1334_v46 = vpop.f32.mrf.mxu0 }
  0xce   : > { %v4842_v45 = vadd.f32 %v1419_v42, %v1376_v35  ;;  %v1378_v47 = vpop.f32.mrf.mxu1  ;;  %v1335_v49 = vadd.f32 %v4824_v19, %v1334_v46  ;;  %v3465_v35 = vld [vmem:[%s4749_s29 + $0x128] sm:$0xf]  ;;  %v1463_v17 = vpop.f32.mrf.mxu3 }
  0xd0   : > { %v1379_v50 = vadd.f32 %v1378_v47, %v1335_v49  ;;  %1514 = vmatmul.bf16.gmra.mxu0 %v3382_v43  ;;  %v3466_v43 = vor.u32 %v4084_v37, %v3465_v35 }
  0xd1   : > { %1558 = vmatmul.bf16.gmra.mxu1 %v3386_v44  ;;  %v3470_v44 = vor.u32 %v4081_v38, %v3467_v39  ;;  %v1462_v38 = vadd.f32 %v1461_v7, %v4833_v31 }
  0xd2   : > { %3701 = vmatmul.msk.bf16.gmra.mxu2 %vm1298_vm0, %v3390_v48  ;;  %v3474_v48 = vor.u32 %v4085_v41, %v3473_v40  ;;  %v1464_v40 = vadd.f32 %v1463_v17, %v4842_v45 }
  0xd5   : > { %v1422_v52 = vpop.f32.mrf.mxu2  ;;  %v1336_v54 = vpop.f32.mrf.mxu0 }
  0xd6   : > { %v4849_v53 = vadd.f32 %v1422_v52, %v1379_v50  ;;  %v1380_v55 = vpop.f32.mrf.mxu1  ;;  %v1337_v56 = vadd.f32 %v4824_v19, %v1336_v54 }
  0xd8   : > { %v1381_v57 = vadd.f32 %v1380_v55, %v1337_v56  ;;  %v3493_v56 = vld [vmem:[%s4749_s29 + $0x160] sm:$0xf] }
  0xdd   : > { %v1424_v0 = vpop.f32.mrf.mxu2  ;;  %v1339_v4 = vpop.f32.mrf.mxu0 }
  0xde   : > { %v4858_v3 = vadd.f32 %v1424_v0, %v1381_v57  ;;  %v1383_v5 = vpop.f32.mrf.mxu1  ;;  %v1340_v8 = vadd.f32 %v4824_v19, %v1339_v4  ;;  %v4143_v57 = vld [vmem:[%s5788_s3 + $0x8] sm:$0xff]  ;;  %v3494_v0 = vor.u32 %v4091_v58, %v3493_v56 }
  0xdf   : > { %1723 = vmatpush.bf16.msrb.mxu3 %v4143_v57 }
  0xe0   : > { %v1384_v9 = vadd.f32 %v1383_v5, %v1340_v8  ;;  %1519 = vmatmul.bf16.gmra.mxu0 %v3410_v1  ;;  %v3498_v1 = vor.u32 %v4088_v59, %v3495_v60  ;;  %v3502_v5 = vor.u32 %v4092_v62, %v3501_v61 }
  0xe1   : > { %1563 = vmatmul.bf16.gmra.mxu1 %v3414_v2 }
  0xe2   : > { %3702 = vmatmul.msk.bf16.gmra.mxu2 %vm1298_vm0, %v3418_v6 }
  0xe3   : > { %1724 = vmatpush.bf16.msrb.mxu3 %v4142_v16 }
  0xe5   : > { %v1427_v10 = vpop.f32.mrf.mxu2  ;;  %v4867_v12 = vpop.f32.mrf.mxu0 }
  0xe6   : > { %v4865_v11 = vadd.f32 %v1427_v10, %v1384_v9  ;;  %v4869_v13 = vpop.f32.mrf.mxu1 }
  0xed   : > { %v4880_v22 = vpop.f32.mrf.mxu2  ;;  %v1344_v25 = vpop.f32.mrf.mxu0 }
  0xee   : > { %v1388_v26 = vpop.f32.mrf.mxu1  ;;  %v1345_v28 = vadd.f32 %v4824_v19, %v1344_v25  ;;  %v1466_v25 = vpop.f32.mrf.mxu3 }
  0xef   : > { %v1467_v31 = vadd.f32 %v1466_v25, %v4849_v53 }
  0xf0   : > { %v1389_v29 = vadd.f32 %v1388_v26, %v1345_v28  ;;  %1524 = vmatmul.bf16.gmra.mxu0 %v3438_v23 }
  0xf1   : > { %1568 = vmatmul.bf16.gmra.mxu1 %v3442_v24 }
  0xf2   : > { %3703 = vmatmul.msk.bf16.gmra.mxu2 %vm1298_vm0, %v3446_v27 }
  0xf5   : > { %v1432_v30 = vpop.f32.mrf.mxu2  ;;  %v4886_v33 = vpop.f32.mrf.mxu0 }
  0xf6   : > { %v4884_v32 = vadd.f32 %v1432_v30, %v1389_v29  ;;  %v4888_v34 = vpop.f32.mrf.mxu1  ;;  %v1468_v37 = vpop.f32.mrf.mxu3 }
  0xfd   : > { %v4899_v42 = vpop.f32.mrf.mxu2  ;;  %v1349_v46 = vpop.f32.mrf.mxu0 }
  0xfe   : > { %v1393_v47 = vpop.f32.mrf.mxu1  ;;  %v1350_v49 = vadd.f32 %v4824_v19, %v1349_v46 }
 0x100   : > { %v1394_v50 = vadd.f32 %v1393_v47, %v1350_v49  ;;  %1529 = vmatmul.bf16.gmra.mxu0 %v3466_v43  ;;  %v1471_v47 = vpop.f32.mrf.mxu3 }
 0x101   : > { %1573 = vmatmul.bf16.gmra.mxu1 %v3470_v44 }
 0x102   : > { %3704 = vmatmul.msk.bf16.gmra.mxu2 %vm1298_vm0, %v3474_v48 }
 0x105   : > { %v1437_v51 = vpop.f32.mrf.mxu2  ;;  %v4905_v54 = vpop.f32.mrf.mxu0 }
 0x106   : > { %v4903_v52 = vadd.f32 %v1437_v51, %v1394_v50  ;;  %v4907_v55 = vpop.f32.mrf.mxu1 }
 0x108   : > { %v1473_v62 = vpop.f32.mrf.mxu3 }
 0x10d   : > { %v4918_v63 = vpop.f32.mrf.mxu2  ;;  %v1354_v2 = vpop.f32.mrf.mxu0 }
 0x10e   : > { %v1398_v4 = vpop.f32.mrf.mxu1  ;;  %v1355_v6 = vadd.f32 %v4824_v19, %v1354_v2 }
 0x110   : > { %v1399_v8 = vadd.f32 %v1398_v4, %v1355_v6  ;;  %1534 = vmatmul.bf16.gmra.mxu0 %v3494_v0  ;;  %v1469_v0 = vadd.f32 %v1468_v37, %v4858_v3  ;;  %v4153_v6 = vld [vmem:[%s5790_s5 + $0x18] sm:$0xff]  ;;  %v1476_v53 = vpop.f32.mrf.mxu3 }
 0x111   : > { %1578 = vmatmul.bf16.gmra.mxu1 %v3498_v1  ;;  %1844 = vmatpush.bf16.msra.mxu0 %v4153_v6 }
 0x112   : > { %3705 = vmatmul.msk.bf16.gmra.mxu2 %vm1298_vm0, %v3502_v5 }
 0x115   : > { %v1442_v9 = vpop.f32.mrf.mxu2  ;;  %v4924_v14 = vpop.f32.mrf.mxu0 }
 0x116   : > { %v4922_v10 = vadd.f32 %v1442_v9, %v1399_v8  ;;  %v4926_v15 = vpop.f32.mrf.mxu1  ;;  %v1342_v8 = vadd.f32 %v4824_v19, %v4867_v12 }
 0x11d   : > { %v4931_v18 = vpop.f32.mrf.mxu2  ;;  %v1359_v20 = vpop.f32.mrf.mxu0 }
 0x11e   : > { %v1403_v21 = vpop.f32.mrf.mxu1  ;;  %v1360_v23 = vadd.f32 %v4824_v19, %v1359_v20 }
 0x120   : > { %v1404_v24 = vadd.f32 %v1403_v21, %v1360_v23  ;;  %v1386_v23 = vadd.f32 %v4869_v13, %v1342_v8 }
 0x125   : > { %v1447_v26 = vpop.f32.mrf.mxu2  ;;  %v4936_v28 = vpop.f32.mrf.mxu0 }
 0x126   : > { %v4934_v27 = vadd.f32 %v1447_v26, %v1404_v24  ;;  %v4938_v29 = vpop.f32.mrf.mxu1  ;;  %v1430_v26 = vadd.f32 %v4880_v22, %v1386_v23 }
 0x12d   : > { %v4940_v30 = vpop.f32.mrf.mxu2  ;;  %v1505_v35 = vpop.f32.mrf.mxu0 }
 0x12e   : > { %v1549_v36 = vpop.f32.mrf.mxu1  ;;  %v1506_v41 = vadd.f32 %v1505_v35, %v1462_v38  ;;  %v1474_v38 = vadd.f32 %v1473_v62, %v1430_v26 }
 0x130   : > { %v1550_v48 = vadd.f32 %v1549_v36, %v1506_v41  ;;  %v1472_v36 = vadd.f32 %v1471_v47, %v4865_v11  ;;  %v1478_v41 = vpop.f32.mrf.mxu3 }
 0x135   : > { %v1593_v39 = vpop.f32.mrf.mxu2  ;;  %v1507_v43 = vpop.f32.mrf.mxu0 }
 0x136   : > { %v1551_v44 = vpop.f32.mrf.mxu1  ;;  %v1508_v46 = vadd.f32 %v1507_v43, %v1464_v40  ;;  %v1594_v49 = vadd.f32 %v1593_v39, %v1550_v48 }
 0x138   : > { %v1552_v50 = vadd.f32 %v1551_v44, %v1508_v46  ;;  %v1628_v59 = vmax.f32 %v1594_v49, 0.0  ;;  %v1347_v46 = vadd.f32 %v4824_v19, %v4886_v33  ;;  %v1477_v33 = vadd.f32 %v1476_v53, %v4884_v32 }
 0x13a   : > { %v1391_v11 = vadd.f32 %v4888_v34, %v1347_v46  ;;  %v4151_v46 = vld [vmem:[%s5790_s5 + $0x8] sm:$0xff] }
 0x13d   : > { %v1595_v51 = vpop.f32.mrf.mxu2  ;;  %v1510_v57 = vpop.f32.mrf.mxu0 }
 0x13e   : > { %v1596_v56 = vadd.f32 %v1595_v51, %v1552_v50  ;;  %v1554_v58 = vpop.f32.mrf.mxu1  ;;  %v1511_v1 = vadd.f32 %v1510_v57, %v1467_v31  ;;  %v1481_v57 = vpop.f32.mrf.mxu3 }
 0x140   : > { %v1629_v60 = vmax.f32 %v1596_v56, 0.0  ;;  %v1555_v7 = vadd.f32 %v1554_v58, %v1511_v1  ;;  %v4152_v58 = vld [vmem:[%s5790_s5 + $0x10] sm:$0xff] }
 0x141   : > { %1845 = vmatpush.bf16.msra.mxu0 %v4152_v58 }
 0x142   : > { %v1642_v61 = vpack.c.bf16 %v1629_v60, %v1628_v59  ;;  %v1435_v59 = vadd.f32 %v4899_v42, %v1391_v11 }
 0x144   : > { %1725 = vmatmul.bf16.vlgmr.msrb.gmra.mxu3 %v1642_v61  ;;  %v1479_v62 = vadd.f32 %v1478_v41, %v1435_v59 }
 0x145   : > { %v1598_v45 = vpop.f32.mrf.mxu2  ;;  %v1512_v2 = vpop.f32.mrf.mxu0  ;;  %1846 = vmatpush.bf16.msra.mxu0 %v4151_v46 }
 0x146   : > { %v1556_v4 = vpop.f32.mrf.mxu1  ;;  %v1513_v5 = vadd.f32 %v1512_v2, %v1469_v0  ;;  %v1599_v9 = vadd.f32 %v1598_v45, %v1555_v7  ;;  %v1483_v2 = vpop.f32.mrf.mxu3 }
 0x148   : > { %v1557_v16 = vadd.f32 %v1556_v4, %v1513_v5  ;;  %v1630_v24 = vmax.f32 %v1599_v9, 0.0  ;;  %v1352_v4 = vadd.f32 %v4824_v19, %v4905_v54 }
 0x14a   : > { %v1396_v32 = vadd.f32 %v4907_v55, %v1352_v4 }
 0x14d   : > { %v1600_v17 = vpop.f32.mrf.mxu2  ;;  %v1515_v21 = vpop.f32.mrf.mxu0 }
 0x14e   : > { %v1601_v20 = vadd.f32 %v1600_v17, %v1557_v16  ;;  %v1559_v3 = vpop.f32.mrf.mxu1  ;;  %v1516_v12 = vadd.f32 %v1515_v21, %v1472_v36  ;;  %v1440_v17 = vadd.f32 %v4918_v63, %v1396_v32  ;;  %v1482_v21 = vadd.f32 %v1481_v57, %v4903_v52 }
 0x150   : > { %v1631_v25 = vmax.f32 %v1601_v20, 0.0  ;;  %v1560_v44 = vadd.f32 %v1559_v3, %v1516_v12  ;;  %v1486_v3 = vpop.f32.mrf.mxu3 }
 0x152   : > { %v1643_v35 = vpack.c.bf16 %v1631_v25, %v1630_v24  ;;  %v1484_v24 = vadd.f32 %v1483_v2, %v1440_v17 }
 0x154   : > { %1730 = vmatmul.bf16.gmra.mxu3 %v1643_v35 }
 0x155   : > { %v1603_v37 = vpop.f32.mrf.mxu2  ;;  %v1517_v39 = vpop.f32.mrf.mxu0 }
 0x156   : > { %v1561_v40 = vpop.f32.mrf.mxu1  ;;  %v1518_v43 = vadd.f32 %v1517_v39, %v1474_v38  ;;  %v1604_v13 = vadd.f32 %v1603_v37, %v1560_v44  ;;  %v1357_v37 = vadd.f32 %v4824_v19, %v4924_v14  ;;  %v1487_v14 = vadd.f32 %v1486_v3, %v4922_v10 }
 0x158   : > { %v1562_v48 = vadd.f32 %v1561_v40, %v1518_v43  ;;  %v1632_v47 = vmax.f32 %v1604_v13, 0.0  ;;  %v1488_v41 = vpop.f32.mrf.mxu3  ;;  %v1401_v52 = vadd.f32 %v4926_v15, %v1357_v37 }
 0x15a   : > { %v1445_v13 = vadd.f32 %v4931_v18, %v1401_v52  ;;  %v1362_v18 = vadd.f32 %v4824_v19, %v4936_v28 }
 0x15d   : > { %v1605_v49 = vpop.f32.mrf.mxu2  ;;  %v1520_v22 = vpop.f32.mrf.mxu0 }
 0x15e   : > { %v1606_v50 = vadd.f32 %v1605_v49, %v1562_v48  ;;  %v1564_v51 = vpop.f32.mrf.mxu1  ;;  %v1521_v31 = vadd.f32 %v1520_v22, %v1477_v33  ;;  %v4150_v49 = vld [vmem:[%s5790_s5] sm:$0xff]  ;;  %v1489_v22 = vadd.f32 %v1488_v41, %v1445_v13 }
 0x15f   : > { %1847 = vmatpush.bf16.msra.mxu0 %v4150_v49 }
 0x160   : > { %v1633_v56 = vmax.f32 %v1606_v50, 0.0  ;;  %v1565_v1 = vadd.f32 %v1564_v51, %v1521_v31 }
 0x162   : > { %v1644_v60 = vpack.c.bf16 %v1633_v56, %v1632_v47  ;;  %v1491_v56 = vpop.f32.mrf.mxu3 }
 0x163   : > { %v1492_v2 = vadd.f32 %v1491_v56, %v4934_v27  ;;  %v4275_v27 = vld [vmem:[%s5791_s4] ss:$0 sm:$0xff]  ;;  %s4216_s4 = smul.u32 392, %s574_s30 }
 0x164   : > { %1735 = vmatmul.bf16.gmra.mxu3 %v1644_v60 }
 0x165   : > { %v1608_v61 = vpop.f32.mrf.mxu2  ;;  %v1522_v45 = vpop.f32.mrf.mxu0  ;;  %s5509_s21 = scalar_lea.vmem [#allocation5], %s4216_s4 }
 0x166   : > { %v1566_v0 = vpop.f32.mrf.mxu1  ;;  %v1523_v34 = vadd.f32 %v1522_v45, %v1479_v62  ;;  %v1609_v5 = vadd.f32 %v1608_v61, %v1565_v1  ;;  %v1406_v61 = vadd.f32 %v4938_v29, %v1362_v18 }
 0x168   : > { %v1567_v6 = vadd.f32 %v1566_v0, %v1523_v34  ;;  %v1634_v16 = vmax.f32 %v1609_v5, 0.0  ;;  %v1450_v0 = vadd.f32 %v4940_v30, %v1406_v61 }
 0x16a   : > { %v1493_v1 = vpop.f32.mrf.mxu3 }
 0x16b   : > { %v1494_v5 = vadd.f32 %v1493_v1, %v1450_v0 }
 0x16d   : > { %v1610_v7 = vpop.f32.mrf.mxu2  ;;  %v1525_v8 = vpop.f32.mrf.mxu0 }
 0x16e   : > { %v1611_v42 = vadd.f32 %v1610_v7, %v1567_v6  ;;  %v1569_v9 = vpop.f32.mrf.mxu1  ;;  %v1526_v54 = vadd.f32 %v1525_v8, %v1482_v21 }
 0x170   : > { %v1635_v53 = vmax.f32 %v1611_v42, 0.0  ;;  %v1570_v36 = vadd.f32 %v1569_v9, %v1526_v54 }
 0x172   : > { %v1645_v20 = vpack.c.bf16 %v1635_v53, %v1634_v16 }
 0x174   : > { %1740 = vmatmul.bf16.gmra.mxu3 %v1645_v20 }
 0x175   : > { %v1613_v23 = vpop.f32.mrf.mxu2  ;;  %v1527_v25 = vpop.f32.mrf.mxu0 }
 0x176   : > { %v1571_v26 = vpop.f32.mrf.mxu1  ;;  %v1528_v35 = vadd.f32 %v1527_v25, %v1484_v24  ;;  %v1614_v55 = vadd.f32 %v1613_v23, %v1570_v36  ;;  %v3763_v25 = vld [vmem:[%s5792_s7] sm:$0xf] }
 0x178   : > { %v1572_v38 = vadd.f32 %v1571_v26, %v1528_v35  ;;  %v1636_v43 = vmax.f32 %v1614_v55, 0.0  ;;  %v4154_v26 = vld [vmem:[%s5792_s7] sm:$0x30] }
 0x179   : > { %v3764_v35 = vor.u32 %v4154_v26, %v3763_v25 }
 0x17b   : > { %v1940_v37 = vsel %vm1938_vm2, %v3764_v35, 0 }
 0x17c   : > { %1949 = vmatpush.bf16.msra.mxu1 %v1940_v37 }
 0x17d   : > { %v1615_v12 = vpop.f32.mrf.mxu2  ;;  %v1530_v63 = vpop.f32.mrf.mxu0 }
 0x17e   : > { %v1616_v39 = vadd.f32 %v1615_v12, %v1572_v38  ;;  %v1574_v40 = vpop.f32.mrf.mxu1  ;;  %v1531_v15 = vadd.f32 %v1530_v63, %v1487_v14 }
 0x180   : > { %v1637_v44 = vmax.f32 %v1616_v39, 0.0  ;;  %v1575_v57 = vadd.f32 %v1574_v40, %v1531_v15 }
 0x182   : > { %v1646_v48 = vpack.c.bf16 %v1637_v44, %v1636_v43 }
 0x184   : > { %1745 = vmatmul.bf16.gmra.mxu3 %v1646_v48 }
 0x185   : > { %v1618_v50 = vpop.f32.mrf.mxu2  ;;  %v1532_v51 = vpop.f32.mrf.mxu0 }
 0x186   : > { %v1576_v11 = vpop.f32.mrf.mxu1  ;;  %v1533_v47 = vadd.f32 %v1532_v51, %v1489_v22  ;;  %v1619_v58 = vadd.f32 %v1618_v50, %v1575_v57 }
 0x188   : > { %v1577_v59 = vadd.f32 %v1576_v11, %v1533_v47  ;;  %v1638_v62 = vmax.f32 %v1619_v58, 0.0 }
 0x18d   : > { %v1620_v10 = vpop.f32.mrf.mxu2  ;;  %v1535_v33 = vpop.f32.mrf.mxu0 }
 0x18e   : > { %v1621_v60 = vadd.f32 %v1620_v10, %v1577_v59  ;;  %v1579_v45 = vpop.f32.mrf.mxu1  ;;  %v1536_v19 = vadd.f32 %v1535_v33, %v1492_v2 }
 0x190   : > { %v1639_v31 = vmax.f32 %v1621_v60, 0.0  ;;  %v1580_v7 = vadd.f32 %v1579_v45, %v1536_v19 }
 0x192   : > { %v1647_v34 = vpack.c.bf16 %v1639_v31, %v1638_v62 }
 0x194   : > { %1750 = vmatmul.bf16.gmra.mxu3 %v1647_v34 }
 0x195   : > { %v1623_v4 = vpop.f32.mrf.mxu2  ;;  %v1537_v28 = vpop.f32.mrf.mxu0 }
 0x196   : > { %v1538_v6 = vadd.f32 %v1537_v28, %v1494_v5  ;;  %v1581_v42 = vpop.f32.mrf.mxu1  ;;  %v1624_v8 = vadd.f32 %v1623_v4, %v1580_v7  ;;  %v4276_v7 = vld [vmem:[%s5793_s6] ss:$0 sm:$0xff] }
 0x198   : > { %v1582_v9 = vadd.f32 %v1581_v42, %v1538_v6  ;;  %v1640_v16 = vmax.f32 %v1624_v8, 0.0 }
 0x19d   : > { %v1625_v29 = vpop.f32.mrf.mxu2 }
 0x19e   : > { %v1626_v32 = vadd.f32 %v1625_v29, %v1582_v9 }
 0x1a0   : > { %v1641_v53 = vmax.f32 %v1626_v32, 0.0 }
 0x1a2   : > { %v1648_v17 = vpack.c.bf16 %v1641_v53, %v1640_v16  ;;  %v1993_v53 = vld [vmem:[%s5764_s9] sm:$0x3] }
 0x1a4   : > { %1755 = vmatmul.bf16.gmra.mxu3 %v1648_v17  ;;  %v4589_v17 = vmov 65535  }
 0x1c7   : > { %v1726_v30 = vpop.f32.mrf.mxu3 }
 0x1c8   : > { %v1727_v20 = vadd.f32 %v4275_v27, %v1726_v30  ;;  %v2022_v30 = vsel %vm2020_vm4, 4294967295, %v4589_v17 }
 0x1ca   : > { %v1761_v23 = vmax.f32 %v1727_v20, 0.0 }
 0x1cf   : > { %v1728_v21 = vpop.f32.mrf.mxu3 }
 0x1d0   : > { %v1729_v3 = vadd.f32 %v4275_v27, %v1728_v21 }
 0x1d2   : > { %v1762_v24 = vmax.f32 %v1729_v3, 0.0 }
 0x1d4   : > { %v1775_v54 = vpack.c.bf16 %v1762_v24, %v1761_v23 }
 0x1d6   : > { %3754 = vmatmul.msk.bf16.vlgmr.msra.gmra.mxu0 %vm1818_vm1, %v1775_v54 }
 0x1d7   : > { %v1731_v36 = vpop.f32.mrf.mxu3 }
 0x1d8   : > { %v1732_v55 = vadd.f32 %v4275_v27, %v1731_v36 }
 0x1da   : > { %v1763_v39 = vmax.f32 %v1732_v55, 0.0 }
 0x1df   : > { %v1733_v38 = vpop.f32.mrf.mxu3 }
 0x1e0   : > { %v1734_v12 = vadd.f32 %v4275_v27, %v1733_v38 }
 0x1e2   : > { %v1764_v63 = vmax.f32 %v1734_v12, 0.0 }
 0x1e4   : > { %v1776_v40 = vpack.c.bf16 %v1764_v63, %v1763_v39 }
 0x1e6   : > { %3755 = vmatmul.msk.bf16.gmra.mxu0 %vm1818_vm1, %v1776_v40 }
 0x1e7   : > { %v1736_v41 = vpop.f32.mrf.mxu3 }
 0x1e8   : > { %v1737_v52 = vadd.f32 %v4275_v27, %v1736_v41 }
 0x1ea   : > { %v1765_v46 = vmax.f32 %v1737_v52, 0.0 }
 0x1ef   : > { %v1738_v43 = vpop.f32.mrf.mxu3 }
 0x1f0   : > { %v1739_v44 = vadd.f32 %v4275_v27, %v1738_v43 }
 0x1f2   : > { %v1766_v13 = vmax.f32 %v1739_v44, 0.0 }
 0x1f4   : > { %v1777_v48 = vpack.c.bf16 %v1766_v13, %v1765_v46 }
 0x1f6   : > { %3756 = vmatmul.msk.bf16.gmra.mxu0 %vm1818_vm1, %v1777_v48 }
 0x1f7   : > { %v1741_v14 = vpop.f32.mrf.mxu3 }
 0x1f8   : > { %v1742_v49 = vadd.f32 %v4275_v27, %v1741_v14 }
 0x1fa   : > { %v1767_v15 = vmax.f32 %v1742_v49, 0.0 }
 0x1ff   : > { %v1743_v50 = vpop.f32.mrf.mxu3 }
 0x200   : > { %v1744_v22 = vadd.f32 %v4275_v27, %v1743_v50 }
 0x202   : > { %v1768_v51 = vmax.f32 %v1744_v22, 0.0 }
 0x204   : > { %v1778_v11 = vpack.c.bf16 %v1768_v51, %v1767_v15 }
 0x206   : > { %3757 = vmatmul.msk.bf16.gmra.mxu0 %vm1818_vm1, %v1778_v11 }
 0x207   : > { %v1746_v47 = vpop.f32.mrf.mxu3 }
 0x208   : > { %v1747_v56 = vadd.f32 %v4275_v27, %v1746_v47 }
 0x20a   : > { %v1769_v58 = vmax.f32 %v1747_v56, 0.0 }
 0x20f   : > { %v1748_v57 = vpop.f32.mrf.mxu3 }
 0x210   : > { %v1749_v18 = vadd.f32 %v4275_v27, %v1748_v57 }
 0x212   : > { %v1770_v59 = vmax.f32 %v1749_v18, 0.0 }
 0x214   : > { %v1779_v10 = vpack.c.bf16 %v1770_v59, %v1769_v58 }
 0x216   : > { %3758 = vmatmul.msk.bf16.gmra.mxu0 %vm1818_vm1, %v1779_v10 }
 0x217   : > { %v1751_v60 = vpop.f32.mrf.mxu3 }
 0x218   : > { %v1752_v33 = vadd.f32 %v4275_v27, %v1751_v60 }
 0x21a   : > { %v1771_v31 = vmax.f32 %v1752_v33, 0.0 }
 0x21f   : > { %v1753_v61 = vpop.f32.mrf.mxu3 }
 0x220   : > { %v1754_v62 = vadd.f32 %v4275_v27, %v1753_v61 }
 0x222   : > { %v1772_v45 = vmax.f32 %v1754_v62, 0.0 }
 0x224   : > { %v1780_v0 = vpack.c.bf16 %v1772_v45, %v1771_v31 }
 0x226   : > { %3759 = vmatmul.msk.bf16.gmra.mxu0 %vm1818_vm1, %v1780_v0  ;;  %v4277_v0 = vld [vmem:[%s5763_s8] ss:$0 sm:$0xff] }
 0x227   : > { %v1756_v34 = vpop.f32.mrf.mxu3 }
 0x228   : > { %v1757_v1 = vadd.f32 %v4275_v27, %v1756_v34 }
 0x22a   : > { %v1773_v5 = vmax.f32 %v1757_v1, 0.0 }
 0x22f   : > { %v1758_v2 = vpop.f32.mrf.mxu3 }
 0x230   : > { %v1759_v4 = vadd.f32 %v4275_v27, %v1758_v2  ;;  %v2023_v27 = vsel %vm2021_vm5, %v2022_v30, 0 }
 0x231   : > { %v2025_v21 = vand.u32 %v2023_v27, %v1993_v53 }
 0x232   : > { %v1774_v19 = vmax.f32 %v1759_v4, 0.0 }
 0x233   : > { %2034 = vmatpush.bf16.msra.mxu2 %v2025_v21 }
 0x234   : > { %v1781_v28 = vpack.c.bf16 %v1774_v19, %v1773_v5  ;;  %v3781_v5 = vld [vmem:[%s5766_s11] sm:$0xf]  ;;  %v4155_v19 = vld [vmem:[%s5766_s11] sm:$0x30] }
 0x236   : > { %3760 = vmatmul.msk.bf16.gmra.mxu0 %vm1818_vm1, %v1781_v28  ;;  %v3782_v28 = vor.u32 %v4155_v19, %v3781_v5 }
 0x253   : > { %v1849_v6 = vpop.f32.mrf.mxu0 }
 0x254   : > { %v1850_v42 = vadd.f32 %v4276_v7, %v1849_v6 }
 0x256   : > { %v1884_v29 = vmax.f32 %v1850_v42, 0.0 }
 0x25b   : > { %v1851_v8 = vpop.f32.mrf.mxu0 }
 0x25c   : > { %v1852_v9 = vadd.f32 %v4276_v7, %v1851_v8 }
 0x25e   : > { %v1885_v32 = vmax.f32 %v1852_v9, 0.0 }
 0x260   : > { %v1898_v16 = vpack.c.bf16 %v1885_v32, %v1884_v29 }
 0x262   : > { %3765 = vmatmul.msk.bf16.vlgmr.msra.gmra.mxu1 %vm1916_vm3, %v1898_v16 }
 0x263   : > { %v1854_v20 = vpop.f32.mrf.mxu0 }
 0x264   : > { %v1855_v3 = vadd.f32 %v4276_v7, %v1854_v20 }
 0x266   : > { %v1886_v54 = vmax.f32 %v1855_v3, 0.0 }
 0x26b   : > { %v1856_v23 = vpop.f32.mrf.mxu0 }
 0x26c   : > { %v1857_v24 = vadd.f32 %v4276_v7, %v1856_v23 }
 0x26e   : > { %v1887_v25 = vmax.f32 %v1857_v24, 0.0 }
 0x270   : > { %v1899_v26 = vpack.c.bf16 %v1887_v25, %v1886_v54 }
 0x272   : > { %3766 = vmatmul.msk.bf16.gmra.mxu1 %vm1916_vm3, %v1899_v26 }
 0x273   : > { %v1859_v35 = vpop.f32.mrf.mxu0 }
 0x274   : > { %v1860_v36 = vadd.f32 %v4276_v7, %v1859_v35 }
 0x276   : > { %v1888_v38 = vmax.f32 %v1860_v36, 0.0 }
 0x27b   : > { %v1861_v37 = vpop.f32.mrf.mxu0 }
 0x27c   : > { %v1862_v55 = vadd.f32 %v4276_v7, %v1861_v37 }
 0x27e   : > { %v1889_v12 = vmax.f32 %v1862_v55, 0.0 }
 0x280   : > { %v1900_v39 = vpack.c.bf16 %v1889_v12, %v1888_v38 }
 0x282   : > { %3767 = vmatmul.msk.bf16.gmra.mxu1 %vm1916_vm3, %v1900_v39 }
 0x283   : > { %v1864_v63 = vpop.f32.mrf.mxu0 }
 0x284   : > { %v1865_v40 = vadd.f32 %v4276_v7, %v1864_v63 }
 0x286   : > { %v1890_v43 = vmax.f32 %v1865_v40, 0.0 }
 0x28b   : > { %v1866_v41 = vpop.f32.mrf.mxu0 }
 0x28c   : > { %v1867_v52 = vadd.f32 %v4276_v7, %v1866_v41 }
 0x28e   : > { %v1891_v44 = vmax.f32 %v1867_v52, 0.0 }
 0x290   : > { %v1901_v46 = vpack.c.bf16 %v1891_v44, %v1890_v43  ;;  %v4278_v44 = vld [vmem:[%s5765_s10] ss:$0 sm:$0xff] }
 0x292   : > { %3768 = vmatmul.msk.bf16.gmra.mxu1 %vm1916_vm3, %v1901_v46 }
 0x293   : > { %v1869_v13 = vpop.f32.mrf.mxu0 }
 0x294   : > { %v1870_v48 = vadd.f32 %v4276_v7, %v1869_v13 }
 0x296   : > { %v1892_v50 = vmax.f32 %v1870_v48, 0.0 }
 0x29b   : > { %v1871_v14 = vpop.f32.mrf.mxu0 }
 0x29c   : > { %v1872_v49 = vadd.f32 %v4276_v7, %v1871_v14 }
 0x29e   : > { %v1893_v22 = vmax.f32 %v1872_v49, 0.0 }
 0x2a0   : > { %v1902_v15 = vpack.c.bf16 %v1893_v22, %v1892_v50 }
 0x2a2   : > { %3769 = vmatmul.msk.bf16.gmra.mxu1 %vm1916_vm3, %v1902_v15  ;;  %v4159_v15 = vld [vmem:[%s5768_s13 + $0x18] sm:$0xff] }
 0x2a3   : > { %v1874_v51 = vpop.f32.mrf.mxu0  ;;  %2253 = vmatpush.bf16.msrb.mxu0 %v4159_v15 }
 0x2a4   : > { %v1875_v11 = vadd.f32 %v4276_v7, %v1874_v51 }
 0x2a6   : > { %v1894_v57 = vmax.f32 %v1875_v11, 0.0 }
 0x2ab   : > { %v1876_v47 = vpop.f32.mrf.mxu0 }
 0x2ac   : > { %v1877_v56 = vadd.f32 %v4276_v7, %v1876_v47 }
 0x2ae   : > { %v1895_v18 = vmax.f32 %v1877_v56, 0.0 }
 0x2b0   : > { %v1903_v58 = vpack.c.bf16 %v1895_v18, %v1894_v57 }
 0x2b2   : > { %3770 = vmatmul.msk.bf16.gmra.mxu1 %vm1916_vm3, %v1903_v58 }
 0x2b3   : > { %v1879_v59 = vpop.f32.mrf.mxu0 }
 0x2b4   : > { %v1880_v10 = vadd.f32 %v4276_v7, %v1879_v59 }
 0x2b6   : > { %v1896_v61 = vmax.f32 %v1880_v10, 0.0 }
 0x2bb   : > { %v1881_v60 = vpop.f32.mrf.mxu0 }
 0x2bc   : > { %v1882_v33 = vadd.f32 %v4276_v7, %v1881_v60  ;;  %v2125_v7 = vsel %vm1938_vm2, %v3782_v28, 0 }
 0x2bd   : > { %2134 = vmatpush.bf16.msra.mxu3 %v2125_v7 }
 0x2be   : > { %v1897_v62 = vmax.f32 %v1882_v33, 0.0 }
 0x2c0   : > { %v1904_v31 = vpack.c.bf16 %v1897_v62, %v1896_v61 }
 0x2c2   : > { %3771 = vmatmul.msk.bf16.gmra.mxu1 %vm1916_vm3, %v1904_v31  ;;  %v4158_v31 = vld [vmem:[%s5768_s13 + $0x10] sm:$0xff] }
 0x2c3   : > { %2254 = vmatpush.bf16.msrb.mxu0 %v4158_v31 }
 0x2df   : > { %v1951_v45 = vpop.f32.mrf.mxu1 }
 0x2e0   : > { %v1952_v1 = vadd.f32 %v4277_v0, %v1951_v45 }
 0x2e7   : > { %v1953_v34 = vpop.f32.mrf.mxu1 }
 0x2e8   : > { %v1954_v2 = vadd.f32 %v4277_v0, %v1953_v34 }
 0x2ea   : > { %v1986_v4 = vpack.c.bf16 %v1954_v2, %v1952_v1 }
 0x2ec   : > { %3772 = vmatmul.msk.bf16.vlgmr.msra.gmra.mxu2 %vm1998_vm6, %v1986_v4 }
 0x2ef   : > { %v1956_v6 = vpop.f32.mrf.mxu1 }
 0x2f0   : > { %v1957_v8 = vadd.f32 %v4277_v0, %v1956_v6 }
 0x2f7   : > { %v1958_v42 = vpop.f32.mrf.mxu1 }
 0x2f8   : > { %v1959_v9 = vadd.f32 %v4277_v0, %v1958_v42 }
 0x2fa   : > { %v1987_v29 = vpack.c.bf16 %v1959_v9, %v1957_v8 }
 0x2fc   : > { %3773 = vmatmul.msk.bf16.gmra.mxu2 %vm1998_vm6, %v1987_v29  ;;  %v4157_v29 = vld [vmem:[%s5768_s13 + $0x8] sm:$0xff] }
 0x2fd   : > { %2255 = vmatpush.bf16.msrb.mxu0 %v4157_v29 }
 0x2ff   : > { %v1961_v32 = vpop.f32.mrf.mxu1 }
 0x300   : > { %v1962_v53 = vadd.f32 %v4277_v0, %v1961_v32  ;;  %v4156_v32 = vld [vmem:[%s5768_s13] sm:$0xff] }
 0x301   : > { %2256 = vmatpush.bf16.msrb.mxu0 %v4156_v32 }
 0x307   : > { %v1963_v16 = vpop.f32.mrf.mxu1 }
 0x308   : > { %v1964_v17 = vadd.f32 %v4277_v0, %v1963_v16 }
 0x30a   : > { %v1988_v30 = vpack.c.bf16 %v1964_v17, %v1962_v53 }
 0x30c   : > { %3774 = vmatmul.msk.bf16.gmra.mxu2 %vm1998_vm6, %v1988_v30 }
 0x30f   : > { %v1966_v27 = vpop.f32.mrf.mxu1 }
 0x310   : > { %v1967_v21 = vadd.f32 %v4277_v0, %v1966_v27 }
 0x317   : > { %v1968_v20 = vpop.f32.mrf.mxu1 }
 0x318   : > { %v1969_v3 = vadd.f32 %v4277_v0, %v1968_v20 }
 0x31a   : > { %v1989_v23 = vpack.c.bf16 %v1969_v3, %v1967_v21 }
 0x31c   : > { %3775 = vmatmul.msk.bf16.gmra.mxu2 %vm1998_vm6, %v1989_v23 }
 0x31f   : > { %v1971_v24 = vpop.f32.mrf.mxu1 }
 0x320   : > { %v1972_v25 = vadd.f32 %v4277_v0, %v1971_v24 }
 0x327   : > { %v1973_v54 = vpop.f32.mrf.mxu1 }
 0x328   : > { %v1974_v26 = vadd.f32 %v4277_v0, %v1973_v54 }
 0x32a   : > { %v1990_v35 = vpack.c.bf16 %v1974_v26, %v1972_v25 }
 0x32c   : > { %3776 = vmatmul.msk.bf16.gmra.mxu2 %vm1998_vm6, %v1990_v35 }
 0x32f   : > { %v1976_v36 = vpop.f32.mrf.mxu1 }
 0x330   : > { %v1977_v55 = vadd.f32 %v4277_v0, %v1976_v36 }
 0x337   : > { %v1978_v37 = vpop.f32.mrf.mxu1 }
 0x338   : > { %v1979_v38 = vadd.f32 %v4277_v0, %v1978_v37  ;;  %v5055_v37 = vld [vmem:[%s5767_s12] ss:$0 sm:$0xff] }
 0x33a   : > { %v1991_v12 = vpack.c.bf16 %v1979_v38, %v1977_v55 }
 0x33c   : > { %3777 = vmatmul.msk.bf16.gmra.mxu2 %vm1998_vm6, %v1991_v12 }
 0x33f   : > { %v1981_v39 = vpop.f32.mrf.mxu1 }
 0x340   : > { %v1982_v40 = vadd.f32 %v4277_v0, %v1981_v39 }
 0x347   : > { %v1983_v63 = vpop.f32.mrf.mxu1 }
 0x348   : > { %v1984_v41 = vadd.f32 %v4277_v0, %v1983_v63 }
 0x34a   : > { %v1992_v52 = vpack.c.bf16 %v1984_v41, %v1982_v40  ;;  %v4209_v41 = vld [vmem:[%s5770_s15 + $0x18c] sm:$0xf] }
 0x34c   : > { %3778 = vmatmul.msk.bf16.gmra.mxu2 %vm1998_vm6, %v1992_v52  ;;  %v4013_v52 = vld [vmem:[%s5770_s15 + $0x1a4] sm:$0xf0] }
 0x36f   : > { %v2036_v43 = vpop.f32.mrf.mxu2 }
 0x370   : > { %v2037_v46 = vadd.f32 %v4278_v44, %v2036_v43  ;;  %v4019_v43 = vld [vmem:[%s5770_s15 + $0x190] sm:$0xf] }
 0x372   : > { %v2071_v14 = vmax.f32 %v2037_v46, 0.0  ;;  %v4213_v46 = vld [vmem:[%s5770_s15 + $0x1a8] sm:$0xf0] }
 0x377   : > { %v2038_v13 = vpop.f32.mrf.mxu2 }
 0x378   : > { %v2039_v48 = vadd.f32 %v4278_v44, %v2038_v13  ;;  %v4020_v13 = vor.u32 %v4213_v46, %v4019_v43 }
 0x37a   : > { %v2072_v49 = vmax.f32 %v2039_v48, 0.0  ;;  %2770 = vmatpush.bf16.msrb.mxu3 %v4020_v13 }
 0x37c   : > { %v2085_v50 = vpack.c.bf16 %v2072_v49, %v2071_v14  ;;  %v4011_v14 = vld [vmem:[%s5770_s15 + $0x188] sm:$0xf]  ;;  %v4212_v49 = vld [vmem:[%s5770_s15 + $0x1a0] sm:$0xf0] }
 0x37e   : > { %3783 = vmatmul.msk.bf16.vlgmr.msra.gmra.mxu3 %vm1916_vm3, %v2085_v50  ;;  %v4012_v50 = vor.u32 %v4212_v49, %v4011_v14  ;;  %v3899_v14 = vld [vmem:[%s5770_s15 + $0xa8] sm:$0xf]  ;;  %v4184_v49 = vld [vmem:[%s5770_s15 + $0xc0] sm:$0xf0] }
 0x37f   : > { %v2041_v22 = vpop.f32.mrf.mxu2 }
 0x380   : > { %v2042_v51 = vadd.f32 %v4278_v44, %v2041_v22  ;;  %2682 = vmatpush.bf16.msrb.mxu1 %v4012_v50  ;;  %v3900_v50 = vor.u32 %v4184_v49, %v3899_v14  ;;  %v4161_v49 = vld [vmem:[%s5770_s15 + $0xc] sm:$0xf] }
 0x382   : > { %v2073_v56 = vmax.f32 %v2042_v51, 0.0 }
 0x387   : > { %v2043_v11 = vpop.f32.mrf.mxu2 }
 0x388   : > { %v2044_v47 = vadd.f32 %v4278_v44, %v2043_v11 }
 0x38a   : > { %v2074_v57 = vmax.f32 %v2044_v47, 0.0 }
 0x38c   : > { %v2086_v18 = vpack.c.bf16 %v2074_v57, %v2073_v56  ;;  %v4202_v57 = vld [vmem:[%s5770_s15 + $0x154] sm:$0xf] }
 0x38e   : > { %3784 = vmatmul.msk.bf16.gmra.mxu3 %vm1916_vm3, %v2086_v18  ;;  %v3985_v18 = vld [vmem:[%s5770_s15 + $0x16c] sm:$0xf0] }
 0x38f   : > { %v2046_v58 = vpop.f32.mrf.mxu2 }
 0x390   : > { %v2047_v59 = vadd.f32 %v4278_v44, %v2046_v58  ;;  %v3991_v58 = vld [vmem:[%s5770_s15 + $0x158] sm:$0xf] }
 0x392   : > { %v2075_v33 = vmax.f32 %v2047_v59, 0.0  ;;  %v3988_v59 = vor.u32 %v4202_v57, %v3985_v18  ;;  %v3871_v57 = vld [vmem:[%s5770_s15 + $0x70] sm:$0xf]  ;;  %v4177_v18 = vld [vmem:[%s5770_s15 + $0x88] sm:$0xf0] }
 0x397   : > { %v2048_v10 = vpop.f32.mrf.mxu2 }
 0x398   : > { %v2049_v60 = vadd.f32 %v4278_v44, %v2048_v10  ;;  %v4206_v10 = vld [vmem:[%s5770_s15 + $0x170] sm:$0xf0] }
 0x39a   : > { %v2076_v61 = vmax.f32 %v2049_v60, 0.0  ;;  %v3992_v60 = vor.u32 %v4206_v10, %v3991_v58  ;;  %v4210_v10 = vld [vmem:[%s5770_s15 + $0x194] sm:$0xf] }
 0x39c   : > { %v2087_v62 = vpack.c.bf16 %v2076_v61, %v2075_v33  ;;  %v3983_v33 = vld [vmem:[%s5770_s15 + $0x150] sm:$0xf]  ;;  %v4205_v61 = vld [vmem:[%s5770_s15 + $0x168] sm:$0xf0]  ;;  %2771 = vmatpush.bf16.msrb.mxu3 %v3992_v60 }
 0x39d   : > { %v3984_v31 = vor.u32 %v4205_v61, %v3983_v33  ;;  %v4021_v60 = vld [vmem:[%s5770_s15 + $0x1ac] sm:$0xf0]  ;;  %v4167_v33 = vld [vmem:[%s5770_s15 + $0x3c] sm:$0xf] }
 0x39e   : > { %3785 = vmatmul.msk.bf16.gmra.mxu3 %vm1916_vm3, %v2087_v62  ;;  %v4024_v61 = vor.u32 %v4210_v10, %v4021_v60  ;;  %v4204_v10 = vld [vmem:[%s5770_s15 + $0x164] sm:$0xf]  ;;  %v4001_v60 = vld [vmem:[%s5770_s15 + $0x17c] sm:$0xf0] }
 0x39f   : > { %v2051_v45 = vpop.f32.mrf.mxu2  ;;  %2683 = vmatpush.bf16.msrb.mxu1 %v3984_v31  ;;  %v3851_v31 = vld [vmem:[%s5770_s15 + $0x40] sm:$0xf] }
 0x3a0   : > { %v2052_v0 = vadd.f32 %v4278_v44, %v2051_v45  ;;  %v4195_v45 = vld [vmem:[%s5770_s15 + $0x11c] sm:$0xf]  ;;  %2814 = vmatpush.bf16.msra.mxu0 %v4024_v61  ;;  %v4004_v61 = vor.u32 %v4204_v10, %v4001_v60 }
 0x3a2   : > { %v2077_v2 = vmax.f32 %v2052_v0, 0.0  ;;  %v3957_v0 = vld [vmem:[%s5770_s15 + $0x134] sm:$0xf0] }
 0x3a7   : > { %v2053_v34 = vpop.f32.mrf.mxu2 }
 0x3a8   : > { %v2054_v1 = vadd.f32 %v4278_v44, %v2053_v34  ;;  %v3960_v34 = vor.u32 %v4195_v45, %v3957_v0  ;;  %v4171_v45 = vld [vmem:[%s5770_s15 + $0x58] sm:$0xf0] }
 0x3aa   : > { %v2078_v4 = vmax.f32 %v2054_v1, 0.0  ;;  %v3963_v1 = vld [vmem:[%s5770_s15 + $0x120] sm:$0xf] }
 0x3ac   : > { %v2088_v5 = vpack.c.bf16 %v2078_v4, %v2077_v2  ;;  %v4199_v2 = vld [vmem:[%s5770_s15 + $0x138] sm:$0xf0] }
 0x3ad   : > { %v3964_v4 = vor.u32 %v4199_v2, %v3963_v1  ;;  %v4203_v1 = vld [vmem:[%s5770_s15 + $0x15c] sm:$0xf]  ;;  %v3993_v2 = vld [vmem:[%s5770_s15 + $0x174] sm:$0xf0] }
 0x3ae   : > { %3786 = vmatmul.msk.bf16.gmra.mxu3 %vm1916_vm3, %v2088_v5 }
 0x3af   : > { %v2056_v19 = vpop.f32.mrf.mxu2  ;;  %2772 = vmatpush.bf16.msrb.mxu3 %v3964_v4  ;;  %v3996_v4 = vor.u32 %v4203_v1, %v3993_v2  ;;  %v4207_v1 = vld [vmem:[%s5770_s15 + $0x178] sm:$0xf0] }
 0x3b0   : > { %v2057_v28 = vadd.f32 %v4278_v44, %v2056_v19 }
 0x3b1   : > { %2815 = vmatpush.bf16.msra.mxu0 %v3996_v4 }
 0x3b2   : > { %v2079_v42 = vmax.f32 %v2057_v28, 0.0 }
 0x3b7   : > { %v2058_v6 = vpop.f32.mrf.mxu2 }
 0x3b8   : > { %v2059_v7 = vadd.f32 %v4278_v44, %v2058_v6 }
 0x3ba   : > { %v2080_v8 = vmax.f32 %v2059_v7, 0.0 }
 0x3bc   : > { %v2089_v9 = vpack.c.bf16 %v2080_v8, %v2079_v42  ;;  %v3955_v8 = vld [vmem:[%s5770_s15 + $0x118] sm:$0xf] }
 0x3be   : > { %3787 = vmatmul.msk.bf16.gmra.mxu3 %vm1916_vm3, %v2089_v9  ;;  %v4198_v9 = vld [vmem:[%s5770_s15 + $0x130] sm:$0xf0] }
 0x3bf   : > { %v2061_v16 = vpop.f32.mrf.mxu2  ;;  %v3956_v29 = vor.u32 %v4198_v9, %v3955_v8 }
 0x3c0   : > { %v2062_v53 = vadd.f32 %v4278_v44, %v2061_v16  ;;  %v4188_v16 = vld [vmem:[%s5770_s15 + $0xe4] sm:$0xf] }
 0x3c1   : > { %2684 = vmatpush.bf16.msrb.mxu1 %v3956_v29 }
 0x3c2   : > { %v2081_v27 = vmax.f32 %v2062_v53, 0.0  ;;  %v3929_v53 = vld [vmem:[%s5770_s15 + $0xfc] sm:$0xf0] }
 0x3c7   : > { %v2063_v17 = vpop.f32.mrf.mxu2 }
 0x3c8   : > { %v2064_v30 = vadd.f32 %v4278_v44, %v2063_v17  ;;  %v3932_v17 = vor.u32 %v4188_v16, %v3929_v53  ;;  %v3937_v16 = vld [vmem:[%s5770_s15 + $0x104] sm:$0xf0] }
 0x3ca   : > { %v2082_v20 = vmax.f32 %v2064_v30, 0.0  ;;  %v3935_v30 = vld [vmem:[%s5770_s15 + $0xe8] sm:$0xf] }
 0x3cc   : > { %v2090_v21 = vpack.c.bf16 %v2082_v20, %v2081_v27  ;;  %v4192_v27 = vld [vmem:[%s5770_s15 + $0x100] sm:$0xf0] }
 0x3cd   : > { %v3936_v20 = vor.u32 %v4192_v27, %v3935_v30 }
 0x3ce   : > { %3788 = vmatmul.msk.bf16.gmra.mxu3 %vm1916_vm3, %v2090_v21 }
 0x3cf   : > { %v2066_v3 = vpop.f32.mrf.mxu2  ;;  %2773 = vmatpush.bf16.msrb.mxu3 %v3936_v20 }
 0x3d0   : > { %v2067_v23 = vadd.f32 %v4278_v44, %v2066_v3 }
 0x3d2   : > { %v2083_v25 = vmax.f32 %v2067_v23, 0.0 }
 0x3d7   : > { %v2068_v24 = vpop.f32.mrf.mxu2 }
 0x3d8   : > { %v2069_v54 = vadd.f32 %v4278_v44, %v2068_v24  ;;  %v4016_v44 = vor.u32 %v4209_v41, %v4013_v52 }
 0x3da   : > { %v2084_v26 = vmax.f32 %v2069_v54, 0.0  ;;  %2726 = vmatpush.bf16.msrb.mxu2 %v4016_v44 }
 0x3dc   : > { %v2091_v35 = vpack.c.bf16 %v2084_v26, %v2083_v25  ;;  %v3927_v26 = vld [vmem:[%s5770_s15 + $0xe0] sm:$0xf] }
 0x3de   : > { %3789 = vmatmul.msk.bf16.gmra.mxu3 %vm1916_vm3, %v2091_v35  ;;  %2727 = vmatpush.bf16.msrb.mxu2 %v3988_v59  ;;  %v4191_v35 = vld [vmem:[%s5770_s15 + $0xf8] sm:$0xf0]  ;;  %v3872_v59 = vor.u32 %v4177_v18, %v3871_v57  ;;  %v4027_v18 = vld [vmem:[%s5770_s15 + $0x198] sm:$0xf] }
 0x3e2   : > { %2728 = vmatpush.bf16.msrb.mxu2 %v3960_v34  ;;  %v3852_v34 = vor.u32 %v4171_v45, %v3851_v31 }
 0x3e6   : > { %2729 = vmatpush.bf16.msrb.mxu2 %v3932_v17 }
 0x401   : > { %v2136_v36 = vpop.f32.mrf.mxu3 }
 0x402   : > { %v2137_v55 = vadd.f32 %v5055_v37, %v2136_v36  ;;  %v3928_v36 = vor.u32 %v4191_v35, %v3927_v26 }
 0x404   : > { %v2171_v39 = vmax.f32 %v2137_v55, 0.0  ;;  %2685 = vmatpush.bf16.msrb.mxu1 %v3928_v36 }
 0x408   : > { %2686 = vmatpush.bf16.msrb.mxu1 %v3900_v50  ;;  %v3825_v50 = vld [vmem:[%s5770_s15 + $0x24] sm:$0xf0] }
 0x409   : > { %v2138_v38 = vpop.f32.mrf.mxu3 }
 0x40a   : > { %v2139_v12 = vadd.f32 %v5055_v37, %v2138_v38  ;;  %v4181_v38 = vld [vmem:[%s5770_s15 + $0xac] sm:$0xf] }
 0x40c   : > { %v2172_v63 = vmax.f32 %v2139_v12, 0.0  ;;  %v3901_v12 = vld [vmem:[%s5770_s15 + $0xc4] sm:$0xf0]  ;;  %2687 = vmatpush.bf16.msrb.mxu1 %v3872_v59 }
 0x40e   : > { %v2185_v40 = vpack.c.bf16 %v2172_v63, %v2171_v39  ;;  %v3904_v39 = vor.u32 %v4181_v38, %v3901_v12  ;;  %v3907_v63 = vld [vmem:[%s5770_s15 + $0xb0] sm:$0xf]  ;;  %v4160_v12 = vld [vmem:[%s5770_s15 + $0x4] sm:$0xf] }
 0x410   : > { %3806 = vmatmul.msk.bf16.vlgmr.msrb.gmra.mxu0 %vm1818_vm1, %v2185_v40  ;;  %v4185_v40 = vld [vmem:[%s5770_s15 + $0xc8] sm:$0xf0]  ;;  %2730 = vmatpush.bf16.msrb.mxu2 %v3904_v39  ;;  %v3817_v39 = vld [vmem:[%s5770_s15 + $0x1c] sm:$0xf0] }
 0x411   : > { %v2141_v48 = vpop.f32.mrf.mxu3  ;;  %v3908_v41 = vor.u32 %v4185_v40, %v3907_v63  ;;  %v3823_v63 = vld [vmem:[%s5770_s15 + $0x8] sm:$0xf]  ;;  %v3820_v40 = vor.u32 %v4160_v12, %v3817_v39  ;;  %v3943_v12 = vld [vmem:[%s5770_s15 + $0xf0] sm:$0xf]  ;;  %v4193_v39 = vld [vmem:[%s5770_s15 + $0x108] sm:$0xf0] }
 0x412   : > { %v2142_v22 = vadd.f32 %v5055_v37, %v2141_v48 }
 0x413   : > { %2774 = vmatpush.bf16.msrb.mxu3 %v3908_v41  ;;  %v4164_v41 = vld [vmem:[%s5770_s15 + $0x20] sm:$0xf0] }
 0x414   : > { %v2173_v11 = vmax.f32 %v2142_v22, 0.0  ;;  %v4174_v22 = vld [vmem:[%s5770_s15 + $0x74] sm:$0xf] }
 0x419   : > { %v2143_v15 = vpop.f32.mrf.mxu3 }
 0x41a   : > { %v2144_v51 = vadd.f32 %v5055_v37, %v2143_v15  ;;  %v3873_v15 = vld [vmem:[%s5770_s15 + $0x8c] sm:$0xf0] }
 0x41c   : > { %v2174_v47 = vmax.f32 %v2144_v51, 0.0  ;;  %v3879_v51 = vld [vmem:[%s5770_s15 + $0x78] sm:$0xf] }
 0x41e   : > { %v2186_v56 = vpack.c.bf16 %v2174_v47, %v2173_v11  ;;  %v3876_v47 = vor.u32 %v4174_v22, %v3873_v15  ;;  %v3828_v22 = vor.u32 %v4161_v49, %v3825_v50  ;;  %v4211_v15 = vld [vmem:[%s5770_s15 + $0x19c] sm:$0xf] }
 0x420   : > { %3807 = vmatmul.msk.bf16.gmra.mxu0 %vm1818_vm1, %v2186_v56  ;;  %v4178_v56 = vld [vmem:[%s5770_s15 + $0x90] sm:$0xf0]  ;;  %2731 = vmatpush.bf16.msrb.mxu2 %v3876_v47 }
 0x421   : > { %v2146_v62 = vpop.f32.mrf.mxu3  ;;  %v3880_v58 = vor.u32 %v4178_v56, %v3879_v51  ;;  %v4029_v51 = vld [vmem:[%s5770_s15 + $0x1b4] sm:$0xf0]  ;;  %v4215_v56 = vld [vmem:[%s5770_s15 + $0x1b8] sm:$0xf0] }
 0x422   : > { %v2147_v5 = vadd.f32 %v5055_v37, %v2146_v62  ;;  %v3845_v62 = vld [vmem:[%s5770_s15 + $0x54] sm:$0xf0]  ;;  %v4032_v47 = vor.u32 %v4211_v15, %v4029_v51  ;;  %v4186_v51 = vld [vmem:[%s5770_s15 + $0xd0] sm:$0xf0] }
 0x423   : > { %2775 = vmatpush.bf16.msrb.mxu3 %v3880_v58  ;;  %v3848_v0 = vor.u32 %v4167_v33, %v3845_v62  ;;  %v4214_v58 = vld [vmem:[%s5770_s15 + $0x1b0] sm:$0xf0]  ;;  %v4007_v33 = vld [vmem:[%s5770_s15 + $0x168] sm:$0xf]  ;;  %v4208_v62 = vld [vmem:[%s5770_s15 + $0x180] sm:$0xf0] }
 0x424   : > { %v2175_v6 = vmax.f32 %v2147_v5, 0.0  ;;  %v3843_v5 = vld [vmem:[%s5770_s15 + $0x38] sm:$0xf]  ;;  %v4028_v59 = vor.u32 %v4214_v58, %v4027_v18  ;;  %v4008_v31 = vor.u32 %v4208_v62, %v4007_v33  ;;  %v3895_v58 = vld [vmem:[%s5770_s15 + $0x88] sm:$0xf] }
 0x425   : > { %2732 = vmatpush.bf16.msrb.mxu2 %v3848_v0  ;;  %v5303_v0 = vld [vmem:[%s5769_s14] ss:$0 sm:$0xff]  ;;  %v3915_v15 = vld [vmem:[%s5770_s15 + $0xb8] sm:$0xf] }
 0x427   : > { %2776 = vmatpush.bf16.msrb.mxu3 %v3852_v34  ;;  %v3999_v34 = vld [vmem:[%s5770_s15 + $0x160] sm:$0xf] }
 0x428   : > { %v4000_v2 = vor.u32 %v4207_v1, %v3999_v34  ;;  %v3887_v34 = vld [vmem:[%s5770_s15 + $0x80] sm:$0xf]  ;;  %v4179_v1 = vld [vmem:[%s5770_s15 + $0x98] sm:$0xf0] }
 0x429   : > { %v2148_v19 = vpop.f32.mrf.mxu3  ;;  %2733 = vmatpush.bf16.msrb.mxu2 %v3820_v40  ;;  %v4183_v40 = vld [vmem:[%s5770_s15 + $0xbc] sm:$0xf] }
 0x42a   : > { %v2149_v28 = vadd.f32 %v5055_v37, %v2148_v19  ;;  %v4196_v19 = vld [vmem:[%s5770_s15 + $0x124] sm:$0xf] }
 0x42c   : > { %v2176_v7 = vmax.f32 %v2149_v28, 0.0  ;;  %v3965_v28 = vld [vmem:[%s5770_s15 + $0x13c] sm:$0xf0] }
 0x42d   : > { %v3968_v9 = vor.u32 %v4196_v19, %v3965_v28  ;;  %2902 = vmatpush.bf16.msra.mxu2 %v4032_v47 }
 0x42e   : > { %v2187_v42 = vpack.c.bf16 %v2176_v7, %v2175_v6  ;;  %v4170_v6 = vld [vmem:[%s5770_s15 + $0x50] sm:$0xf0] }
 0x42f   : > { %v3844_v7 = vor.u32 %v4170_v6, %v3843_v5  ;;  %2816 = vmatpush.bf16.msra.mxu0 %v3968_v9  ;;  %v3979_v9 = vld [vmem:[%s5770_s15 + $0x130] sm:$0xf] }
 0x430   : > { %3808 = vmatmul.msk.bf16.gmra.mxu0 %vm1818_vm1, %v2187_v42 }
 0x431   : > { %v2151_v32 = vpop.f32.mrf.mxu3  ;;  %2688 = vmatpush.bf16.msrb.mxu1 %v3844_v7  ;;  %2903 = vmatpush.bf16.msra.mxu2 %v4004_v61 }
 0x432   : > { %v2152_v21 = vadd.f32 %v5055_v37, %v2151_v32  ;;  %v4189_v32 = vld [vmem:[%s5770_s15 + $0xec] sm:$0xf] }
 0x433   : > { %v3940_v30 = vor.u32 %v4189_v32, %v3937_v16  ;;  %v4201_v32 = vld [vmem:[%s5770_s15 + $0x148] sm:$0xf0] }
 0x434   : > { %v2177_v24 = vmax.f32 %v2152_v21, 0.0  ;;  %v3980_v16 = vor.u32 %v4201_v32, %v3979_v9 }
 0x435   : > { %2817 = vmatpush.bf16.msra.mxu0 %v3940_v30  ;;  %v4200_v30 = vld [vmem:[%s5770_s15 + $0x140] sm:$0xf0] }
 0x439   : > { %v2153_v3 = vpop.f32.mrf.mxu3 }
 0x43a   : > { %v2154_v23 = vadd.f32 %v5055_v37, %v2153_v3 }
 0x43c   : > { %v2178_v54 = vmax.f32 %v2154_v23, 0.0 }
 0x43e   : > { %v2188_v25 = vpack.c.bf16 %v2178_v54, %v2177_v24  ;;  %v4182_v24 = vld [vmem:[%s5770_s15 + $0xb4] sm:$0xf]  ;;  %v3909_v54 = vld [vmem:[%s5770_s15 + $0xcc] sm:$0xf0] }
 0x440   : > { %3809 = vmatmul.msk.bf16.gmra.mxu0 %vm1818_vm1, %v2188_v25  ;;  %v3912_v25 = vor.u32 %v4182_v24, %v3909_v54 }
 0x441   : > { %v2156_v55 = vpop.f32.mrf.mxu3 }
 0x442   : > { %v2157_v52 = vadd.f32 %v5055_v37, %v2156_v55  ;;  %2818 = vmatpush.bf16.msra.mxu0 %v3912_v25  ;;  %v4175_v55 = vld [vmem:[%s5770_s15 + $0x7c] sm:$0xf]  ;;  %v4190_v25 = vld [vmem:[%s5770_s15 + $0xf4] sm:$0xf] }
 0x444   : > { %v2179_v46 = vmax.f32 %v2157_v52, 0.0  ;;  %v3815_v52 = vld [vmem:[%s5770_s15] sm:$0xf] }
 0x449   : > { %v2158_v43 = vpop.f32.mrf.mxu3 }
 0x44a   : > { %v2159_v44 = vadd.f32 %v5055_v37, %v2158_v43  ;;  %v4163_v43 = vld [vmem:[%s5770_s15 + $0x18] sm:$0xf0] }
 0x44c   : > { %v2180_v13 = vmax.f32 %v2159_v44, 0.0  ;;  %v3824_v44 = vor.u32 %v4164_v41, %v3823_v63  ;;  %v3944_v63 = vor.u32 %v4193_v39, %v3943_v12  ;;  %v3917_v41 = vld [vmem:[%s5770_s15 + $0xd4] sm:$0xf0] }
 0x44e   : > { %v2189_v48 = vpack.c.bf16 %v2180_v13, %v2179_v46  ;;  %v3816_v46 = vor.u32 %v4163_v43, %v3815_v52  ;;  %v4168_v13 = vld [vmem:[%s5770_s15 + $0x44] sm:$0xf]  ;;  %2777 = vmatpush.bf16.msrb.mxu3 %v3824_v44  ;;  %v3920_v52 = vor.u32 %v4183_v40, %v3917_v41  ;;  %v3923_v43 = vld [vmem:[%s5770_s15 + $0xc0] sm:$0xf]  ;;  %v4187_v44 = vld [vmem:[%s5770_s15 + $0xd8] sm:$0xf0] }
 0x450   : > { %3810 = vmatmul.msk.bf16.gmra.mxu0 %vm1818_vm1, %v2189_v48  ;;  %v3853_v48 = vld [vmem:[%s5770_s15 + $0x5c] sm:$0xf0]  ;;  %2689 = vmatpush.bf16.msrb.mxu1 %v3816_v46  ;;  %v3924_v46 = vor.u32 %v4187_v44, %v3923_v43 }
 0x451   : > { %v2161_v11 = vpop.f32.mrf.mxu3  ;;  %v3856_v14 = vor.u32 %v4168_v13, %v3853_v48 }
 0x452   : > { %v2162_v42 = vadd.f32 %v5055_v37, %v2161_v11  ;;  %v4035_v11 = vld [vmem:[%s5770_s15 + $0x1a0] sm:$0xf] }
 0x453   : > { %v4036_v57 = vor.u32 %v4215_v56, %v4035_v11  ;;  %v3916_v11 = vor.u32 %v4186_v51, %v3915_v15  ;;  %v4176_v56 = vld [vmem:[%s5770_s15 + $0x84] sm:$0xf] }
 0x454   : > { %v2181_v53 = vmax.f32 %v2162_v42, 0.0  ;;  %2858 = vmatpush.bf16.msra.mxu1 %v4028_v59  ;;  %v4197_v42 = vld [vmem:[%s5770_s15 + $0x12c] sm:$0xf]  ;;  %v4180_v59 = vld [vmem:[%s5770_s15 + $0xa0] sm:$0xf0] }
 0x455   : > { %2946 = vmatpush.bf16.msra.mxu3 %v4036_v57  ;;  %v3889_v57 = vld [vmem:[%s5770_s15 + $0x9c] sm:$0xf0]  ;;  %v3896_v10 = vor.u32 %v4180_v59, %v3895_v58 }
 0x456   : > { %v3892_v18 = vor.u32 %v4176_v56, %v3889_v57 }
 0x458   : > { %2859 = vmatpush.bf16.msra.mxu1 %v4000_v2  ;;  %v3888_v2 = vor.u32 %v4179_v1, %v3887_v34 }
 0x459   : > { %v2163_v8 = vpop.f32.mrf.mxu3  ;;  %2947 = vmatpush.bf16.msra.mxu3 %v4008_v31 }
 0x45a   : > { %v2164_v29 = vadd.f32 %v5055_v37, %v2163_v8  ;;  %v3973_v8 = vld [vmem:[%s5770_s15 + $0x144] sm:$0xf0] }
 0x45c   : > { %v2182_v17 = vmax.f32 %v2164_v29, 0.0  ;;  %v3976_v29 = vor.u32 %v4197_v42, %v3973_v8  ;;  %v4173_v42 = vld [vmem:[%s5770_s15 + $0x68] sm:$0xf0] }
 0x45d   : > { %2948 = vmatpush.bf16.msra.mxu3 %v3980_v16 }
 0x45e   : > { %v2190_v27 = vpack.c.bf16 %v2182_v17, %v2181_v53  ;;  %2904 = vmatpush.bf16.msra.mxu2 %v3976_v29  ;;  %v3971_v17 = vld [vmem:[%s5770_s15 + $0x128] sm:$0xf] }
 0x460   : > { %3811 = vmatmul.msk.bf16.gmra.mxu0 %vm1818_vm1, %v2190_v27  ;;  %v3972_v27 = vor.u32 %v4200_v30, %v3971_v17  ;;  %v3859_v30 = vld [vmem:[%s5770_s15 + $0x48] sm:$0xf] }
 0x461   : > { %v2166_v20 = vpop.f32.mrf.mxu3 }
 0x462   : > { %v2167_v21 = vadd.f32 %v5055_v37, %v2166_v20  ;;  %2860 = vmatpush.bf16.msra.mxu1 %v3972_v27  ;;  %v4172_v27 = vld [vmem:[%s5770_s15 + $0x60] sm:$0xf0] }
 0x464   : > { %v2183_v26 = vmax.f32 %v2167_v21, 0.0 }
 0x466   : > { %2861 = vmatpush.bf16.msra.mxu1 %v3944_v63 }
 0x469   : > { %v2168_v3 = vpop.f32.mrf.mxu3 }
 0x46a   : > { %v2169_v23 = vadd.f32 %v5055_v37, %v2168_v3  ;;  %v3881_v37 = vld [vmem:[%s5770_s15 + $0x94] sm:$0xf0]  ;;  %2862 = vmatpush.bf16.msra.mxu1 %v3916_v11 }
 0x46b   : > { %v3884_v38 = vor.u32 %v4175_v55, %v3881_v37  ;;  %v4194_v55 = vld [vmem:[%s5770_s15 + $0x110] sm:$0xf0] }
 0x46c   : > { %v2184_v35 = vmax.f32 %v2169_v23, 0.0 }
 0x46d   : > { %2819 = vmatpush.bf16.msra.mxu0 %v3884_v38 }
 0x46e   : > { %v2191_v36 = vpack.c.bf16 %v2184_v35, %v2183_v26  ;;  %v3945_v26 = vld [vmem:[%s5770_s15 + $0x10c] sm:$0xf0]  ;;  %v3951_v35 = vld [vmem:[%s5770_s15 + $0xf8] sm:$0xf]  ;;  %2863 = vmatpush.bf16.msra.mxu1 %v3888_v2 }
 0x46f   : > { %v3952_v37 = vor.u32 %v4194_v55, %v3951_v35  ;;  %v3831_v35 = vld [vmem:[%s5770_s15 + $0x10] sm:$0xf] }
 0x470   : > { %3812 = vmatmul.msk.bf16.gmra.mxu0 %vm1818_vm1, %v2191_v36  ;;  %v3948_v36 = vor.u32 %v4190_v25, %v3945_v26  ;;  %v4166_v26 = vld [vmem:[%s5770_s15 + $0x30] sm:$0xf0] }
 0x471   : > { %2820 = vmatpush.bf16.msra.mxu0 %v3856_v14  ;;  %2949 = vmatpush.bf16.msra.mxu3 %v3952_v37 }
 0x472   : > { %2905 = vmatpush.bf16.msra.mxu2 %v3948_v36  ;;  %v4165_v36 = vld [vmem:[%s5770_s15 + $0x28] sm:$0xf0] }
 0x473   : > { %v3832_v37 = vor.u32 %v4165_v36, %v3831_v35 }
 0x475   : > { %2821 = vmatpush.bf16.msra.mxu0 %v3828_v22  ;;  %2950 = vmatpush.bf16.msra.mxu3 %v3924_v46 }
 0x476   : > { %2906 = vmatpush.bf16.msra.mxu2 %v3920_v52 }
 0x479   : > { %2951 = vmatpush.bf16.msra.mxu3 %v3896_v10 }
 0x47a   : > { %2907 = vmatpush.bf16.msra.mxu2 %v3892_v18 }
 0x48d   : > { %v2258_v45 = vpop.f32.mrf.mxu0 }
 0x48e   : > { %v2259_v4 = vadd.f32 %v5303_v0, %v2258_v45 }
 0x490   : > { %v2293_v28 = vmax.f32 %v2259_v4, 0.0 }
 0x495   : > { %v2260_v5 = vpop.f32.mrf.mxu0 }
 0x496   : > { %v2261_v19 = vadd.f32 %v5303_v0, %v2260_v5  ;;  %v4169_v5 = vld [vmem:[%s5770_s15 + $0x4c] sm:$0xf] }
 0x498   : > { %v2294_v6 = vmax.f32 %v2261_v19, 0.0  ;;  %v3861_v19 = vld [vmem:[%s5770_s15 + $0x64] sm:$0xf0] }
 0x49a   : > { %v5313_v7 = vpack.c.bf16 %v2294_v6, %v2293_v28  ;;  %v3864_v28 = vor.u32 %v4169_v5, %v3861_v19  ;;  %v3867_v6 = vld [vmem:[%s5770_s15 + $0x50] sm:$0xf] }
 0x49b   : > { %v3868_v8 = vor.u32 %v4173_v42, %v3867_v6 }
 0x49c   : > { %2690 = vmatmul.bf16.vlgmr.msrb.gmra.mxu1 %v5313_v7  ;;  %2734 = vmatmul.bf16.vlgmr.msrb.gmra.mxu2 %v5313_v7 }
 0x49d   : > { %2778 = vmatmul.bf16.vlgmr.msrb.gmra.mxu3 %v5313_v7  ;;  %2822 = vmatmul.bf16.vlgmr.msra.gmra.mxu0 %v5313_v7  ;;  %v2263_v53 = vpop.f32.mrf.mxu0 }
 0x49e   : > { %v2264_v20 = vadd.f32 %v5303_v0, %v2263_v53  ;;  %2908 = vmatpush.bf16.msra.mxu2 %v3864_v28  ;;  %2952 = vmatpush.bf16.msra.mxu3 %v3868_v8 }
 0x4a0   : > { %v2295_v23 = vmax.f32 %v2264_v20, 0.0  ;;  %v3860_v20 = vor.u32 %v4172_v27, %v3859_v30 }
 0x4a2   : > { %2864 = vmatpush.bf16.msra.mxu1 %v3860_v20 }
 0x4a5   : > { %v2265_v21 = vpop.f32.mrf.mxu0 }
 0x4a6   : > { %v2266_v3 = vadd.f32 %v5303_v0, %v2265_v21  ;;  %2865 = vmatpush.bf16.msra.mxu1 %v3832_v37 }
 0x4a8   : > { %v2296_v24 = vmax.f32 %v2266_v3, 0.0  ;;  %v4162_v3 = vld [vmem:[%s5770_s15 + $0x14] sm:$0xf] }
 0x4aa   : > { %v5339_v54 = vpack.c.bf16 %v2296_v24, %v2295_v23  ;;  %v3833_v23 = vld [vmem:[%s5770_s15 + $0x2c] sm:$0xf0]  ;;  %v3839_v24 = vld [vmem:[%s5770_s15 + $0x18] sm:$0xf] }
 0x4ab   : > { %v3836_v25 = vor.u32 %v4162_v3, %v3833_v23  ;;  %v3840_v55 = vor.u32 %v4166_v26, %v3839_v24 }
 0x4ac   : > { %2695 = vmatmul.bf16.gmra.mxu1 %v5339_v54  ;;  %2739 = vmatmul.bf16.gmra.mxu2 %v5339_v54 }
 0x4ad   : > { %2783 = vmatmul.bf16.gmra.mxu3 %v5339_v54  ;;  %2827 = vmatmul.bf16.gmra.mxu0 %v5339_v54  ;;  %v2268_v38 = vpop.f32.mrf.mxu0 }
 0x4ae   : > { %v2269_v13 = vadd.f32 %v5303_v0, %v2268_v38  ;;  %2909 = vmatpush.bf16.msra.mxu2 %v3836_v25  ;;  %2953 = vmatpush.bf16.msra.mxu3 %v3840_v55 }
 0x4b0   : > { %v2297_v49 = vmax.f32 %v2269_v13, 0.0 }
 0x4b5   : > { %v2270_v48 = vpop.f32.mrf.mxu0 }
 0x4b6   : > { %v2271_v14 = vadd.f32 %v5303_v0, %v2270_v48 }
 0x4b8   : > { %v2298_v50 = vmax.f32 %v2271_v14, 0.0 }
 0x4ba   : > { %v5377_v22 = vpack.c.bf16 %v2298_v50, %v2297_v49 }
 0x4bc   : > { %2700 = vmatmul.bf16.gmra.mxu1 %v5377_v22  ;;  %2744 = vmatmul.bf16.gmra.mxu2 %v5377_v22 }
 0x4bd   : > { %2788 = vmatmul.bf16.gmra.mxu3 %v5377_v22  ;;  %2832 = vmatmul.bf16.gmra.mxu0 %v5377_v22  ;;  %v2273_v47 = vpop.f32.mrf.mxu0 }
 0x4be   : > { %v2274_v60 = vadd.f32 %v5303_v0, %v2273_v47 }
 0x4c0   : > { %v2299_v62 = vmax.f32 %v2274_v60, 0.0 }
 0x4c5   : > { %v2275_v33 = vpop.f32.mrf.mxu0 }
 0x4c6   : > { %v2276_v61 = vadd.f32 %v5303_v0, %v2275_v33 }
 0x4c8   : > { %v2300_v31 = vmax.f32 %v2276_v61, 0.0 }
 0x4ca   : > { %v5403_v45 = vpack.c.bf16 %v2300_v31, %v2299_v62 }
 0x4cc   : > { %2705 = vmatmul.bf16.gmra.mxu1 %v5403_v45  ;;  %2749 = vmatmul.bf16.gmra.mxu2 %v5403_v45 }
 0x4cd   : > { %2793 = vmatmul.bf16.gmra.mxu3 %v5403_v45  ;;  %2837 = vmatmul.bf16.gmra.mxu0 %v5403_v45  ;;  %v2278_v4 = vpop.f32.mrf.mxu0 }
 0x4ce   : > { %v2279_v9 = vadd.f32 %v5303_v0, %v2278_v4 }
 0x4d0   : > { %v2301_v16 = vmax.f32 %v2279_v9, 0.0 }
 0x4d5   : > { %v2280_v29 = vpop.f32.mrf.mxu0 }
 0x4d6   : > { %v2281_v32 = vadd.f32 %v5303_v0, %v2280_v29 }
 0x4d8   : > { %v2302_v53 = vmax.f32 %v2281_v32, 0.0 }
 0x4da   : > { %v5429_v17 = vpack.c.bf16 %v2302_v53, %v2301_v16 }
 0x4dc   : > { %2710 = vmatmul.bf16.gmra.mxu1 %v5429_v17  ;;  %2754 = vmatmul.bf16.gmra.mxu2 %v5429_v17 }
 0x4dd   : > { %2798 = vmatmul.bf16.gmra.mxu3 %v5429_v17  ;;  %2842 = vmatmul.bf16.gmra.mxu0 %v5429_v17  ;;  %v2283_v21 = vpop.f32.mrf.mxu0 }
 0x4de   : > { %v2284_v38 = vadd.f32 %v5303_v0, %v2283_v21 }
 0x4e0   : > { %v2303_v63 = vmax.f32 %v2284_v38, 0.0 }
 0x4e5   : > { %v2285_v12 = vpop.f32.mrf.mxu0 }
 0x4e6   : > { %v2286_v39 = vadd.f32 %v5303_v0, %v2285_v12 }
 0x4e8   : > { %v2304_v40 = vmax.f32 %v2286_v39, 0.0 }
 0x4ea   : > { %v5461_v41 = vpack.c.bf16 %v2304_v40, %v2303_v63 }
 0x4ec   : > { %2715 = vmatmul.bf16.gmra.mxu1 %v5461_v41  ;;  %2759 = vmatmul.bf16.gmra.mxu2 %v5461_v41 }
 0x4ed   : > { %2803 = vmatmul.bf16.gmra.mxu3 %v5461_v41  ;;  %2847 = vmatmul.bf16.gmra.mxu0 %v5461_v41  ;;  %v2288_v52 = vpop.f32.mrf.mxu0 }
 0x4ee   : > { %v2289_v43 = vadd.f32 %v5303_v0, %v2288_v52 }
 0x4f0   : > { %v2305_v13 = vmax.f32 %v2289_v43, 0.0 }
 0x4f5   : > { %v2290_v44 = vpop.f32.mrf.mxu0 }
 0x4f6   : > { %v2291_v46 = vadd.f32 %v5303_v0, %v2290_v44  ;;  %v5482_v0 = vld [vmem:[%s5771_s16] sm:$0x7f] }
 0x4f7   : > { %v5485_v49 = vperm.slane %v5482_v0, 0  ;;  %v5488_v15 = vperm.slane %v5482_v0, 3  ;;  %v5499_v56 = vperm.slane %v5482_v0, 2 }
 0x4f8   : > { %v2306_v48 = vmax.f32 %v2291_v46, 0.0 }
 0x4fa   : > { %v5470_v14 = vpack.c.bf16 %v2306_v48, %v2305_v13 }
 0x4fc   : > { %2720 = vmatmul.bf16.gmra.mxu1 %v5470_v14  ;;  %2764 = vmatmul.bf16.gmra.mxu2 %v5470_v14 }
 0x4fd   : > { %2808 = vmatmul.bf16.gmra.mxu3 %v5470_v14  ;;  %2852 = vmatmul.bf16.gmra.mxu0 %v5470_v14 }
 0x50c   : > { %2866 = vmatmul.bf16.vlgmr.msra.gmra.mxu1 %v5313_v7  ;;  %2910 = vmatmul.bf16.vlgmr.msra.gmra.mxu2 %v5313_v7 }
 0x50d   : > { %2954 = vmatmul.bf16.vlgmr.msra.gmra.mxu3 %v5313_v7  ;;  %v5494_v7 = vperm.slane %v5482_v0, 1 }
 0x519   : > { %v2691_v50 = vpop.f32.mrf.mxu1 }
 0x51a   : > { %v2823_v51 = vpop.f32.mrf.mxu0  ;;  %v2692_v11 = vadd.f32 %v2691_v50, %v5485_v49 }
 0x51b   : > { %v2824_v47 = vadd.f32 %v2823_v51, %v5488_v15 }
 0x51c   : > { %2871 = vmatmul.bf16.gmra.mxu1 %v5339_v54  ;;  %2915 = vmatmul.bf16.gmra.mxu2 %v5339_v54  ;;  %4281 = vtanh.f32 %v2692_v11 }
 0x51d   : > { %2959 = vmatmul.bf16.gmra.mxu3 %v5339_v54  ;;  %4283 = vtanh.f32 %v2824_v47 }
 0x51f   : > { %v2735_v57 = vpop.f32.mrf.mxu2 }
 0x520   : > { %v2736_v18 = vadd.f32 %v2735_v57, %v5494_v7  ;;  %v2779_v58 = vpop.f32.mrf.mxu3 }
 0x521   : > { %v2780_v59 = vadd.f32 %v2779_v58, %v5499_v56  ;;  %v2693_v10 = vpop.f32.mrf.mxu1 }
 0x522   : > { %4285 = vtanh.f32 %v2736_v18  ;;  %v2825_v60 = vpop.f32.mrf.mxu0  ;;  %v2694_v33 = vadd.f32 %v2693_v10, %v5485_v49  ;;  %v4282_v61 = vpop.eup %4281 }
 0x523   : > { %4287 = vtanh.f32 %v2780_v59  ;;  %v2826_v54 = vadd.f32 %v2825_v60, %v5488_v15  ;;  %v4284_v62 = vpop.eup %4283 }
 0x524   : > { %4289 = vtanh.f32 %v2694_v33 }
 0x525   : > { %4291 = vtanh.f32 %v2826_v54 }
 0x527   : > { %v2737_v31 = vpop.f32.mrf.mxu2 }
 0x528   : > { %v4286_v34 = vpop.eup %4285  ;;  %v2738_v1 = vadd.f32 %v2737_v31, %v5494_v7  ;;  %v2781_v2 = vpop.f32.mrf.mxu3 }
 0x529   : > { %v4288_v4 = vpop.eup %4287  ;;  %v3088_v5 = vpack.c.bf16 %v4286_v34, %v4282_v61  ;;  %v2782_v19 = vadd.f32 %v2781_v2, %v5499_v56  ;;  %v2696_v28 = vpop.f32.mrf.mxu1 }
 0x52a   : > { %v3089_v6 = vpack.c.bf16 %v4284_v62, %v4288_v4  ;;  %4293 = vtanh.f32 %v2738_v1  ;;  %v2828_v42 = vpop.f32.mrf.mxu0  ;;  %v2697_v8 = vadd.f32 %v2696_v28, %v5485_v49  ;;  %v4290_v29 = vpop.eup %4289 }
 0x52b   : > { %3144 = vst [vmem:[%s5509_s21] sm:$0xff] %v3088_v5  ;;  %4295 = vtanh.f32 %v2782_v19  ;;  %v2829_v9 = vadd.f32 %v2828_v42, %v5488_v15  ;;  %v4292_v32 = vpop.eup %4291 }
 0x52c   : > { %3145 = vst [vmem:[%s5509_s21 + $0x8] sm:$0xff] %v3089_v6  ;;  %2876 = vmatmul.bf16.gmra.mxu1 %v5377_v22  ;;  %2920 = vmatmul.bf16.gmra.mxu2 %v5377_v22  ;;  %4297 = vtanh.f32 %v2697_v8 }
 0x52d   : > { %2964 = vmatmul.bf16.gmra.mxu3 %v5377_v22  ;;  %4299 = vtanh.f32 %v2829_v9 }
 0x52f   : > { %v2740_v16 = vpop.f32.mrf.mxu2 }
 0x530   : > { %v4294_v53 = vpop.eup %4293  ;;  %v2741_v30 = vadd.f32 %v2740_v16, %v5494_v7  ;;  %v2784_v27 = vpop.f32.mrf.mxu3 }
 0x531   : > { %v4296_v20 = vpop.eup %4295  ;;  %v3092_v21 = vpack.c.bf16 %v4294_v53, %v4290_v29  ;;  %v2785_v3 = vadd.f32 %v2784_v27, %v5499_v56  ;;  %v2698_v23 = vpop.f32.mrf.mxu1 }
 0x532   : > { %v3093_v24 = vpack.c.bf16 %v4292_v32, %v4296_v20  ;;  %4301 = vtanh.f32 %v2741_v30  ;;  %v2830_v25 = vpop.f32.mrf.mxu0  ;;  %v2699_v22 = vadd.f32 %v2698_v23, %v5485_v49  ;;  %v4298_v35 = vpop.eup %4297 }
 0x533   : > { %3149 = vst [vmem:[%s5509_s21 + $0x1c] sm:$0xff] %v3092_v21  ;;  %4303 = vtanh.f32 %v2785_v3  ;;  %v2831_v26 = vadd.f32 %v2830_v25, %v5488_v15  ;;  %v4300_v36 = vpop.eup %4299 }
 0x534   : > { %3150 = vst [vmem:[%s5509_s21 + $0x24] sm:$0xff] %v3093_v24  ;;  %4305 = vtanh.f32 %v2699_v22 }
 0x535   : > { %4307 = vtanh.f32 %v2831_v26 }
 0x537   : > { %v2742_v55 = vpop.f32.mrf.mxu2 }
 0x538   : > { %v4302_v37 = vpop.eup %4301  ;;  %v2743_v38 = vadd.f32 %v2742_v55, %v5494_v7  ;;  %v2786_v12 = vpop.f32.mrf.mxu3 }
 0x539   : > { %v4304_v39 = vpop.eup %4303  ;;  %v3096_v63 = vpack.c.bf16 %v4302_v37, %v4298_v35  ;;  %v2787_v40 = vadd.f32 %v2786_v12, %v5499_v56  ;;  %v2701_v52 = vpop.f32.mrf.mxu1 }
 0x53a   : > { %v3097_v43 = vpack.c.bf16 %v4300_v36, %v4304_v39  ;;  %4309 = vtanh.f32 %v2743_v38  ;;  %v2833_v44 = vpop.f32.mrf.mxu0  ;;  %v2702_v46 = vadd.f32 %v2701_v52, %v5485_v49  ;;  %v4306_v48 = vpop.eup %4305 }
 0x53b   : > { %3153 = vst [vmem:[%s5509_s21 + $0x38] sm:$0xff] %v3096_v63  ;;  %4311 = vtanh.f32 %v2787_v40  ;;  %v2834_v13 = vadd.f32 %v2833_v44, %v5488_v15  ;;  %v4308_v50 = vpop.eup %4307 }
 0x53c   : > { %3154 = vst [vmem:[%s5509_s21 + $0x40] sm:$0xff] %v3097_v43  ;;  %2881 = vmatmul.bf16.gmra.mxu1 %v5403_v45  ;;  %2925 = vmatmul.bf16.gmra.mxu2 %v5403_v45  ;;  %4313 = vtanh.f32 %v2702_v46 }
 0x53d   : > { %2969 = vmatmul.bf16.gmra.mxu3 %v5403_v45  ;;  %4315 = vtanh.f32 %v2834_v13 }
 0x53f   : > { %v2745_v51 = vpop.f32.mrf.mxu2 }
 0x540   : > { %v4310_v11 = vpop.eup %4309  ;;  %v2746_v47 = vadd.f32 %v2745_v51, %v5494_v7  ;;  %v2789_v57 = vpop.f32.mrf.mxu3 }
 0x541   : > { %v4312_v18 = vpop.eup %4311  ;;  %v3100_v58 = vpack.c.bf16 %v4310_v11, %v4306_v48  ;;  %v2790_v59 = vadd.f32 %v2789_v57, %v5499_v56  ;;  %v2703_v10 = vpop.f32.mrf.mxu1 }
 0x542   : > { %v3101_v60 = vpack.c.bf16 %v4308_v50, %v4312_v18  ;;  %4317 = vtanh.f32 %v2746_v47  ;;  %v2835_v33 = vpop.f32.mrf.mxu0  ;;  %v2704_v45 = vadd.f32 %v2703_v10, %v5485_v49  ;;  %v4314_v61 = vpop.eup %4313 }
 0x543   : > { %3157 = vst [vmem:[%s5509_s21 + $0x54] sm:$0xff] %v3100_v58  ;;  %4319 = vtanh.f32 %v2790_v59  ;;  %v2836_v54 = vadd.f32 %v2835_v33, %v5488_v15  ;;  %v4316_v62 = vpop.eup %4315 }
 0x544   : > { %3158 = vst [vmem:[%s5509_s21 + $0x5c] sm:$0xff] %v3101_v60  ;;  %4321 = vtanh.f32 %v2704_v45 }
 0x545   : > { %4323 = vtanh.f32 %v2836_v54 }
 0x547   : > { %v2747_v31 = vpop.f32.mrf.mxu2 }
 0x548   : > { %v4318_v34 = vpop.eup %4317  ;;  %v2748_v1 = vadd.f32 %v2747_v31, %v5494_v7  ;;  %v2791_v2 = vpop.f32.mrf.mxu3 }
 0x549   : > { %v4320_v4 = vpop.eup %4319  ;;  %v3104_v5 = vpack.c.bf16 %v4318_v34, %v4314_v61  ;;  %v2792_v19 = vadd.f32 %v2791_v2, %v5499_v56  ;;  %v2706_v28 = vpop.f32.mrf.mxu1 }
 0x54a   : > { %v3105_v6 = vpack.c.bf16 %v4316_v62, %v4320_v4  ;;  %4325 = vtanh.f32 %v2748_v1  ;;  %v2838_v42 = vpop.f32.mrf.mxu0  ;;  %v2707_v8 = vadd.f32 %v2706_v28, %v5485_v49  ;;  %v4322_v29 = vpop.eup %4321 }
 0x54b   : > { %3161 = vst [vmem:[%s5509_s21 + $0x70] sm:$0xff] %v3104_v5  ;;  %4327 = vtanh.f32 %v2792_v19  ;;  %v2839_v9 = vadd.f32 %v2838_v42, %v5488_v15  ;;  %v4324_v32 = vpop.eup %4323 }
 0x54c   : > { %3162 = vst [vmem:[%s5509_s21 + $0x78] sm:$0xff] %v3105_v6  ;;  %2886 = vmatmul.bf16.gmra.mxu1 %v5429_v17  ;;  %2930 = vmatmul.bf16.gmra.mxu2 %v5429_v17  ;;  %4329 = vtanh.f32 %v2707_v8 }
 0x54d   : > { %2974 = vmatmul.bf16.gmra.mxu3 %v5429_v17  ;;  %4331 = vtanh.f32 %v2839_v9 }
 0x54f   : > { %v2750_v16 = vpop.f32.mrf.mxu2 }
 0x550   : > { %v4326_v53 = vpop.eup %4325  ;;  %v2751_v30 = vadd.f32 %v2750_v16, %v5494_v7  ;;  %v2794_v27 = vpop.f32.mrf.mxu3 }
 0x551   : > { %v4328_v20 = vpop.eup %4327  ;;  %v3108_v21 = vpack.c.bf16 %v4326_v53, %v4322_v29  ;;  %v2795_v3 = vadd.f32 %v2794_v27, %v5499_v56  ;;  %v2708_v23 = vpop.f32.mrf.mxu1 }
 0x552   : > { %v3109_v24 = vpack.c.bf16 %v4324_v32, %v4328_v20  ;;  %4333 = vtanh.f32 %v2751_v30  ;;  %v2840_v25 = vpop.f32.mrf.mxu0  ;;  %v2709_v17 = vadd.f32 %v2708_v23, %v5485_v49  ;;  %v4330_v26 = vpop.eup %4329 }
 0x553   : > { %3165 = vst [vmem:[%s5509_s21 + $0x8c] sm:$0xff] %v3108_v21  ;;  %4335 = vtanh.f32 %v2795_v3  ;;  %v2841_v22 = vadd.f32 %v2840_v25, %v5488_v15  ;;  %v4332_v35 = vpop.eup %4331 }
 0x554   : > { %3166 = vst [vmem:[%s5509_s21 + $0x94] sm:$0xff] %v3109_v24  ;;  %4337 = vtanh.f32 %v2709_v17 }
 0x555   : > { %4339 = vtanh.f32 %v2841_v22 }
 0x557   : > { %v2752_v36 = vpop.f32.mrf.mxu2 }
 0x558   : > { %v4334_v55 = vpop.eup %4333  ;;  %v2753_v37 = vadd.f32 %v2752_v36, %v5494_v7  ;;  %v2796_v38 = vpop.f32.mrf.mxu3 }
 0x559   : > { %v4336_v12 = vpop.eup %4335  ;;  %v3112_v39 = vpack.c.bf16 %v4334_v55, %v4330_v26  ;;  %v2797_v63 = vadd.f32 %v2796_v38, %v5499_v56  ;;  %v2711_v40 = vpop.f32.mrf.mxu1 }
 0x55a   : > { %v3113_v52 = vpack.c.bf16 %v4332_v35, %v4336_v12  ;;  %4341 = vtanh.f32 %v2753_v37  ;;  %v2843_v43 = vpop.f32.mrf.mxu0  ;;  %v2712_v44 = vadd.f32 %v2711_v40, %v5485_v49  ;;  %v4338_v13 = vpop.eup %4337 }
 0x55b   : > { %3169 = vst [vmem:[%s5509_s21 + $0xa8] sm:$0xff] %v3112_v39  ;;  %4343 = vtanh.f32 %v2797_v63  ;;  %v2844_v46 = vadd.f32 %v2843_v43, %v5488_v15  ;;  %v4340_v48 = vpop.eup %4339 }
 0x55c   : > { %3170 = vst [vmem:[%s5509_s21 + $0xb0] sm:$0xff] %v3113_v52  ;;  %2891 = vmatmul.bf16.gmra.mxu1 %v5461_v41  ;;  %2935 = vmatmul.bf16.gmra.mxu2 %v5461_v41  ;;  %4345 = vtanh.f32 %v2712_v44 }
 0x55d   : > { %2979 = vmatmul.bf16.gmra.mxu3 %v5461_v41  ;;  %4347 = vtanh.f32 %v2844_v46 }
 0x55f   : > { %v2755_v50 = vpop.f32.mrf.mxu2 }
 0x560   : > { %v4342_v51 = vpop.eup %4341  ;;  %v2756_v11 = vadd.f32 %v2755_v50, %v5494_v7  ;;  %v2799_v47 = vpop.f32.mrf.mxu3 }
 0x561   : > { %v4344_v57 = vpop.eup %4343  ;;  %v3116_v18 = vpack.c.bf16 %v4342_v51, %v4338_v13  ;;  %v2800_v58 = vadd.f32 %v2799_v47, %v5499_v56  ;;  %v2713_v59 = vpop.f32.mrf.mxu1 }
 0x562   : > { %v3117_v10 = vpack.c.bf16 %v4340_v48, %v4344_v57  ;;  %4349 = vtanh.f32 %v2756_v11  ;;  %v2845_v60 = vpop.f32.mrf.mxu0  ;;  %v2714_v41 = vadd.f32 %v2713_v59, %v5485_v49  ;;  %v4346_v45 = vpop.eup %4345 }
 0x563   : > { %3173 = vst [vmem:[%s5509_s21 + $0xc4] sm:$0xff] %v3116_v18  ;;  %4351 = vtanh.f32 %v2800_v58  ;;  %v2846_v33 = vadd.f32 %v2845_v60, %v5488_v15  ;;  %v4348_v54 = vpop.eup %4347 }
 0x564   : > { %3174 = vst [vmem:[%s5509_s21 + $0xcc] sm:$0xff] %v3117_v10  ;;  %4353 = vtanh.f32 %v2714_v41 }
 0x565   : > { %4355 = vtanh.f32 %v2846_v33 }
 0x567   : > { %v2757_v61 = vpop.f32.mrf.mxu2 }
 0x568   : > { %v4350_v62 = vpop.eup %4349  ;;  %v2758_v31 = vadd.f32 %v2757_v61, %v5494_v7  ;;  %v2801_v34 = vpop.f32.mrf.mxu3 }
 0x569   : > { %v4352_v1 = vpop.eup %4351  ;;  %v3120_v2 = vpack.c.bf16 %v4350_v62, %v4346_v45  ;;  %v2802_v4 = vadd.f32 %v2801_v34, %v5499_v56  ;;  %v2716_v5 = vpop.f32.mrf.mxu1 }
 0x56a   : > { %v3121_v19 = vpack.c.bf16 %v4348_v54, %v4352_v1  ;;  %4357 = vtanh.f32 %v2758_v31  ;;  %v2848_v28 = vpop.f32.mrf.mxu0  ;;  %v2717_v6 = vadd.f32 %v2716_v5, %v5485_v49  ;;  %v4354_v8 = vpop.eup %4353  ;;  %v5599_v1 = vperm.slane %v5482_v0, 4 }
 0x56b   : > { %3177 = vst [vmem:[%s5509_s21 + $0xe0] sm:$0xff] %v3120_v2  ;;  %4359 = vtanh.f32 %v2802_v4  ;;  %v2849_v42 = vadd.f32 %v2848_v28, %v5488_v15  ;;  %v4356_v9 = vpop.eup %4355  ;;  %v5604_v2 = vperm.slane %v5482_v0, 5  ;;  %v5608_v4 = vperm.slane %v5482_v0, 6 }
 0x56c   : > { %3178 = vst [vmem:[%s5509_s21 + $0xe8] sm:$0xff] %v3121_v19  ;;  %2896 = vmatmul.bf16.gmra.mxu1 %v5470_v14  ;;  %2940 = vmatmul.bf16.gmra.mxu2 %v5470_v14  ;;  %4361 = vtanh.f32 %v2717_v6 }
 0x56d   : > { %2984 = vmatmul.bf16.gmra.mxu3 %v5470_v14  ;;  %4363 = vtanh.f32 %v2849_v42 }
 0x56f   : > { %v2760_v29 = vpop.f32.mrf.mxu2 }
 0x570   : > { %v4358_v32 = vpop.eup %4357  ;;  %v2761_v16 = vadd.f32 %v2760_v29, %v5494_v7  ;;  %v2804_v53 = vpop.f32.mrf.mxu3 }
 0x571   : > { %v4360_v30 = vpop.eup %4359  ;;  %v3124_v27 = vpack.c.bf16 %v4358_v32, %v4354_v8  ;;  %v2805_v20 = vadd.f32 %v2804_v53, %v5499_v56  ;;  %v2718_v21 = vpop.f32.mrf.mxu1 }
 0x572   : > { %v3125_v3 = vpack.c.bf16 %v4356_v9, %v4360_v30  ;;  %4365 = vtanh.f32 %v2761_v16  ;;  %v2850_v23 = vpop.f32.mrf.mxu0  ;;  %v2719_v14 = vadd.f32 %v2718_v21, %v5485_v49  ;;  %v4362_v25 = vpop.eup %4361 }
 0x573   : > { %3181 = vst [vmem:[%s5509_s21 + $0xfc] sm:$0xff] %v3124_v27  ;;  %4367 = vtanh.f32 %v2805_v20  ;;  %v2851_v24 = vadd.f32 %v2850_v23, %v5488_v15  ;;  %v4364_v17 = vpop.eup %4363 }
 0x574   : > { %3182 = vst [vmem:[%s5509_s21 + $0x104] sm:$0xff] %v3125_v3  ;;  %4369 = vtanh.f32 %v2719_v14 }
 0x575   : > { %4371 = vtanh.f32 %v2851_v24 }
 0x577   : > { %v2762_v22 = vpop.f32.mrf.mxu2 }
 0x578   : > { %v4366_v26 = vpop.eup %4365  ;;  %v2763_v35 = vadd.f32 %v2762_v22, %v5494_v7  ;;  %v2806_v36 = vpop.f32.mrf.mxu3 }
 0x579   : > { %v4368_v55 = vpop.eup %4367  ;;  %v3128_v37 = vpack.c.bf16 %v4366_v26, %v4362_v25  ;;  %v2807_v38 = vadd.f32 %v2806_v36, %v5499_v56  ;;  %v2721_v12 = vpop.f32.mrf.mxu1 }
 0x57a   : > { %v3129_v39 = vpack.c.bf16 %v4364_v17, %v4368_v55  ;;  %4373 = vtanh.f32 %v2763_v35  ;;  %v2853_v63 = vpop.f32.mrf.mxu0  ;;  %v2722_v40 = vadd.f32 %v2721_v12, %v5485_v49  ;;  %v4370_v43 = vpop.eup %4369 }
 0x57b   : > { %3185 = vst [vmem:[%s5509_s21 + $0x118] sm:$0xff] %v3128_v37  ;;  %4375 = vtanh.f32 %v2807_v38  ;;  %v2854_v52 = vadd.f32 %v2853_v63, %v5488_v15  ;;  %v4372_v44 = vpop.eup %4371 }
 0x57c   : > { %3186 = vst [vmem:[%s5509_s21 + $0x120] sm:$0xff] %v3129_v39  ;;  %4377 = vtanh.f32 %v2722_v40 }
 0x57d   : > { %4379 = vtanh.f32 %v2854_v52 }
 0x57f   : > { %v2765_v46 = vpop.f32.mrf.mxu2 }
 0x580   : > { %v4374_v13 = vpop.eup %4373  ;;  %v2766_v48 = vadd.f32 %v2765_v46, %v5494_v7  ;;  %v2809_v50 = vpop.f32.mrf.mxu3 }
 0x581   : > { %v4376_v51 = vpop.eup %4375  ;;  %v3132_v11 = vpack.c.bf16 %v4374_v13, %v4370_v43  ;;  %v2810_v47 = vadd.f32 %v2809_v50, %v5499_v56  ;;  %v2723_v57 = vpop.f32.mrf.mxu1 }
 0x582   : > { %v3133_v18 = vpack.c.bf16 %v4372_v44, %v4376_v51  ;;  %4381 = vtanh.f32 %v2766_v48  ;;  %v2855_v58 = vpop.f32.mrf.mxu0  ;;  %v2724_v59 = vadd.f32 %v2723_v57, %v5485_v49  ;;  %v4378_v60 = vpop.eup %4377 }
 0x583   : > { %3189 = vst [vmem:[%s5509_s21 + $0x134] sm:$0xff] %v3132_v11  ;;  %4383 = vtanh.f32 %v2810_v47  ;;  %v2856_v10 = vadd.f32 %v2855_v58, %v5488_v15  ;;  %v4380_v41 = vpop.eup %4379 }
 0x584   : > { %3190 = vst [vmem:[%s5509_s21 + $0x13c] sm:$0xff] %v3133_v18  ;;  %4385 = vtanh.f32 %v2724_v59 }
 0x585   : > { %4387 = vtanh.f32 %v2856_v10 }
 0x587   : > { %v2767_v33 = vpop.f32.mrf.mxu2 }
 0x588   : > { %v4382_v45 = vpop.eup %4381  ;;  %v2768_v54 = vadd.f32 %v2767_v33, %v5494_v7  ;;  %v2811_v61 = vpop.f32.mrf.mxu3 }
 0x589   : > { %v4384_v62 = vpop.eup %4383  ;;  %v3136_v31 = vpack.c.bf16 %v4382_v45, %v4378_v60  ;;  %v2812_v34 = vadd.f32 %v2811_v61, %v5499_v56  ;;  %v2867_v49 = vpop.f32.mrf.mxu1 }
 0x58a   : > { %v3137_v15 = vpack.c.bf16 %v4380_v41, %v4384_v62  ;;  %4389 = vtanh.f32 %v2768_v54  ;;  %v2868_v7 = vadd.f32 %v2867_v49, %v5599_v1  ;;  %v4386_v56 = vpop.eup %4385 }
 0x58b   : > { %3193 = vst [vmem:[%s5509_s21 + $0x150] sm:$0xff] %v3136_v31  ;;  %4391 = vtanh.f32 %v2812_v34  ;;  %v4388_v5 = vpop.eup %4387 }
 0x58c   : > { %3194 = vst [vmem:[%s5509_s21 + $0x158] sm:$0xff] %v3137_v15  ;;  %4393 = vtanh.f32 %v2868_v7 }
 0x58f   : > { %v2911_v19 = vpop.f32.mrf.mxu2 }
 0x590   : > { %v4390_v28 = vpop.eup %4389  ;;  %v2912_v6 = vadd.f32 %v2911_v19, %v5604_v2  ;;  %v2955_v42 = vpop.f32.mrf.mxu3 }
 0x591   : > { %v4392_v8 = vpop.eup %4391  ;;  %v3140_v9 = vpack.c.bf16 %v4390_v28, %v4386_v56  ;;  %v2956_v29 = vadd.f32 %v2955_v42, %v5608_v4  ;;  %v2869_v32 = vpop.f32.mrf.mxu1 }
 0x592   : > { %v3141_v16 = vpack.c.bf16 %v4388_v5, %v4392_v8  ;;  %4395 = vtanh.f32 %v2912_v6  ;;  %v2870_v0 = vadd.f32 %v2869_v32, %v5599_v1  ;;  %v4394_v53 = vpop.eup %4393 }
 0x593   : > { %3197 = vst [vmem:[%s5509_s21 + $0x16c] sm:$0xff] %v3140_v9  ;;  %4397 = vtanh.f32 %v2956_v29 }
 0x594   : > { %3198 = vst [vmem:[%s5509_s21 + $0x174] sm:$0xff] %v3141_v16  ;;  %4399 = vtanh.f32 %v2870_v0 }
 0x597   : > { %v2913_v30 = vpop.f32.mrf.mxu2 }
 0x598   : > { %v4396_v27 = vpop.eup %4395  ;;  %v2914_v20 = vadd.f32 %v2913_v30, %v5604_v2  ;;  %v2957_v21 = vpop.f32.mrf.mxu3 }
 0x599   : > { %v4398_v3 = vpop.eup %4397  ;;  %v3090_v23 = vpack.c.bf16 %v4396_v27, %v4394_v53  ;;  %v2958_v14 = vadd.f32 %v2957_v21, %v5608_v4  ;;  %v2872_v24 = vpop.f32.mrf.mxu1 }
 0x59a   : > { %v3091_v25 = vpack.c.bf16 %v4398_v3, %v4398_v3  ;;  %4401 = vtanh.f32 %v2914_v20  ;;  %v2873_v17 = vadd.f32 %v2872_v24, %v5599_v1  ;;  %v4400_v22 = vpop.eup %4399 }
 0x59b   : > { %3146 = vst [vmem:[%s5509_s21 + $0x10] sm:$0xff] %v3090_v23  ;;  %4403 = vtanh.f32 %v2958_v14 }
 0x59c   : > { %3148 = vst.msk [vmem:[%s5509_s21 + $0x18] sm:$0xf] %vm3147_vm7, %v3091_v25  ;;  %4405 = vtanh.f32 %v2873_v17 }
 0x59f   : > { %v2916_v26 = vpop.f32.mrf.mxu2 }
 0x5a0   : > { %v4402_v35 = vpop.eup %4401  ;;  %v2917_v36 = vadd.f32 %v2916_v26, %v5604_v2  ;;  %v2960_v55 = vpop.f32.mrf.mxu3 }
 0x5a1   : > { %v4404_v37 = vpop.eup %4403  ;;  %v3094_v38 = vpack.c.bf16 %v4402_v35, %v4400_v22  ;;  %v2961_v12 = vadd.f32 %v2960_v55, %v5608_v4  ;;  %v2874_v39 = vpop.f32.mrf.mxu1 }
 0x5a2   : > { %v3095_v63 = vpack.c.bf16 %v4404_v37, %v4404_v37  ;;  %4407 = vtanh.f32 %v2917_v36  ;;  %v2875_v40 = vadd.f32 %v2874_v39, %v5599_v1  ;;  %v4406_v52 = vpop.eup %4405 }
 0x5a3   : > { %3151 = vst [vmem:[%s5509_s21 + $0x2c] sm:$0xff] %v3094_v38  ;;  %4409 = vtanh.f32 %v2961_v12 }
 0x5a4   : > { %3152 = vst.msk [vmem:[%s5509_s21 + $0x34] sm:$0xf] %vm3147_vm7, %v3095_v63  ;;  %4411 = vtanh.f32 %v2875_v40 }
 0x5a7   : > { %v2918_v43 = vpop.f32.mrf.mxu2 }
 0x5a8   : > { %v4408_v44 = vpop.eup %4407  ;;  %v2919_v46 = vadd.f32 %v2918_v43, %v5604_v2  ;;  %v2962_v13 = vpop.f32.mrf.mxu3 }
 0x5a9   : > { %v4410_v48 = vpop.eup %4409  ;;  %v3098_v50 = vpack.c.bf16 %v4408_v44, %v4406_v52  ;;  %v2963_v51 = vadd.f32 %v2962_v13, %v5608_v4  ;;  %v2877_v11 = vpop.f32.mrf.mxu1 }
 0x5aa   : > { %v3099_v47 = vpack.c.bf16 %v4410_v48, %v4410_v48  ;;  %4413 = vtanh.f32 %v2919_v46  ;;  %v2878_v57 = vadd.f32 %v2877_v11, %v5599_v1  ;;  %v4412_v18 = vpop.eup %4411 }
 0x5ab   : > { %3155 = vst [vmem:[%s5509_s21 + $0x48] sm:$0xff] %v3098_v50  ;;  %4415 = vtanh.f32 %v2963_v51 }
 0x5ac   : > { %3156 = vst.msk [vmem:[%s5509_s21 + $0x50] sm:$0xf] %vm3147_vm7, %v3099_v47  ;;  %4417 = vtanh.f32 %v2878_v57 }
 0x5af   : > { %v2921_v58 = vpop.f32.mrf.mxu2 }
 0x5b0   : > { %v4414_v59 = vpop.eup %4413  ;;  %v2922_v10 = vadd.f32 %v2921_v58, %v5604_v2  ;;  %v2965_v60 = vpop.f32.mrf.mxu3 }
 0x5b1   : > { %v4416_v41 = vpop.eup %4415  ;;  %v3102_v33 = vpack.c.bf16 %v4414_v59, %v4412_v18  ;;  %v2966_v45 = vadd.f32 %v2965_v60, %v5608_v4  ;;  %v2879_v54 = vpop.f32.mrf.mxu1 }
 0x5b2   : > { %v3103_v61 = vpack.c.bf16 %v4416_v41, %v4416_v41  ;;  %4419 = vtanh.f32 %v2922_v10  ;;  %v2880_v62 = vadd.f32 %v2879_v54, %v5599_v1  ;;  %v4418_v31 = vpop.eup %4417 }
 0x5b3   : > { %3159 = vst [vmem:[%s5509_s21 + $0x64] sm:$0xff] %v3102_v33  ;;  %4421 = vtanh.f32 %v2966_v45 }
 0x5b4   : > { %3160 = vst.msk [vmem:[%s5509_s21 + $0x6c] sm:$0xf] %vm3147_vm7, %v3103_v61  ;;  %4423 = vtanh.f32 %v2880_v62 }
 0x5b7   : > { %v2923_v34 = vpop.f32.mrf.mxu2 }
 0x5b8   : > { %v4420_v49 = vpop.eup %4419  ;;  %v2924_v15 = vadd.f32 %v2923_v34, %v5604_v2  ;;  %v2967_v7 = vpop.f32.mrf.mxu3 }
 0x5b9   : > { %v4422_v56 = vpop.eup %4421  ;;  %v3106_v5 = vpack.c.bf16 %v4420_v49, %v4418_v31  ;;  %v2968_v19 = vadd.f32 %v2967_v7, %v5608_v4  ;;  %v2882_v28 = vpop.f32.mrf.mxu1 }
 0x5ba   : > { %v3107_v6 = vpack.c.bf16 %v4422_v56, %v4422_v56  ;;  %4425 = vtanh.f32 %v2924_v15  ;;  %v2883_v42 = vadd.f32 %v2882_v28, %v5599_v1  ;;  %v4424_v8 = vpop.eup %4423 }
 0x5bb   : > { %3163 = vst [vmem:[%s5509_s21 + $0x80] sm:$0xff] %v3106_v5  ;;  %4427 = vtanh.f32 %v2968_v19 }
 0x5bc   : > { %3164 = vst.msk [vmem:[%s5509_s21 + $0x88] sm:$0xf] %vm3147_vm7, %v3107_v6  ;;  %4429 = vtanh.f32 %v2883_v42 }
 0x5bf   : > { %v2926_v9 = vpop.f32.mrf.mxu2 }
 0x5c0   : > { %v4426_v29 = vpop.eup %4425  ;;  %v2927_v32 = vadd.f32 %v2926_v9, %v5604_v2  ;;  %v2970_v16 = vpop.f32.mrf.mxu3 }
 0x5c1   : > { %v4428_v0 = vpop.eup %4427  ;;  %v3110_v53 = vpack.c.bf16 %v4426_v29, %v4424_v8  ;;  %v2971_v30 = vadd.f32 %v2970_v16, %v5608_v4  ;;  %v2884_v27 = vpop.f32.mrf.mxu1 }
 0x5c2   : > { %v3111_v20 = vpack.c.bf16 %v4428_v0, %v4428_v0  ;;  %4431 = vtanh.f32 %v2927_v32  ;;  %v2885_v21 = vadd.f32 %v2884_v27, %v5599_v1  ;;  %v4430_v3 = vpop.eup %4429 }
 0x5c3   : > { %3167 = vst [vmem:[%s5509_s21 + $0x9c] sm:$0xff] %v3110_v53  ;;  %4433 = vtanh.f32 %v2971_v30 }
 0x5c4   : > { %3168 = vst.msk [vmem:[%s5509_s21 + $0xa4] sm:$0xf] %vm3147_vm7, %v3111_v20  ;;  %4435 = vtanh.f32 %v2885_v21 }
 0x5c7   : > { %v2928_v23 = vpop.f32.mrf.mxu2 }
 0x5c8   : > { %v4432_v14 = vpop.eup %4431  ;;  %v2929_v24 = vadd.f32 %v2928_v23, %v5604_v2  ;;  %v2972_v25 = vpop.f32.mrf.mxu3 }
 0x5c9   : > { %v4434_v17 = vpop.eup %4433  ;;  %v3114_v22 = vpack.c.bf16 %v4432_v14, %v4430_v3  ;;  %v2973_v26 = vadd.f32 %v2972_v25, %v5608_v4  ;;  %v2887_v35 = vpop.f32.mrf.mxu1 }
 0x5ca   : > { %v3115_v36 = vpack.c.bf16 %v4434_v17, %v4434_v17  ;;  %4437 = vtanh.f32 %v2929_v24  ;;  %v2888_v55 = vadd.f32 %v2887_v35, %v5599_v1  ;;  %v4436_v37 = vpop.eup %4435 }
 0x5cb   : > { %3171 = vst [vmem:[%s5509_s21 + $0xb8] sm:$0xff] %v3114_v22  ;;  %4439 = vtanh.f32 %v2973_v26 }
 0x5cc   : > { %3172 = vst.msk [vmem:[%s5509_s21 + $0xc0] sm:$0xf] %vm3147_vm7, %v3115_v36  ;;  %4441 = vtanh.f32 %v2888_v55 }
 0x5cf   : > { %v2931_v38 = vpop.f32.mrf.mxu2 }
 0x5d0   : > { %v4438_v12 = vpop.eup %4437  ;;  %v2932_v39 = vadd.f32 %v2931_v38, %v5604_v2  ;;  %v2975_v63 = vpop.f32.mrf.mxu3 }
 0x5d1   : > { %v4440_v40 = vpop.eup %4439  ;;  %v3118_v52 = vpack.c.bf16 %v4438_v12, %v4436_v37  ;;  %v2976_v43 = vadd.f32 %v2975_v63, %v5608_v4  ;;  %v2889_v44 = vpop.f32.mrf.mxu1 }
 0x5d2   : > { %v3119_v46 = vpack.c.bf16 %v4440_v40, %v4440_v40  ;;  %4443 = vtanh.f32 %v2932_v39  ;;  %v2890_v13 = vadd.f32 %v2889_v44, %v5599_v1  ;;  %v4442_v48 = vpop.eup %4441 }
 0x5d3   : > { %3175 = vst [vmem:[%s5509_s21 + $0xd4] sm:$0xff] %v3118_v52  ;;  %4445 = vtanh.f32 %v2976_v43 }
 0x5d4   : > { %3176 = vst.msk [vmem:[%s5509_s21 + $0xdc] sm:$0xf] %vm3147_vm7, %v3119_v46  ;;  %4447 = vtanh.f32 %v2890_v13 }
 0x5d7   : > { %v2933_v50 = vpop.f32.mrf.mxu2 }
 0x5d8   : > { %v4444_v51 = vpop.eup %4443  ;;  %v2934_v11 = vadd.f32 %v2933_v50, %v5604_v2  ;;  %v2977_v47 = vpop.f32.mrf.mxu3 }
 0x5d9   : > { %v4446_v57 = vpop.eup %4445  ;;  %v3122_v18 = vpack.c.bf16 %v4444_v51, %v4442_v48  ;;  %v2978_v58 = vadd.f32 %v2977_v47, %v5608_v4  ;;  %v2892_v59 = vpop.f32.mrf.mxu1 }
 0x5da   : > { %v3123_v10 = vpack.c.bf16 %v4446_v57, %v4446_v57  ;;  %4449 = vtanh.f32 %v2934_v11  ;;  %v2893_v60 = vadd.f32 %v2892_v59, %v5599_v1  ;;  %v4448_v41 = vpop.eup %4447 }
 0x5db   : > { %3179 = vst [vmem:[%s5509_s21 + $0xf0] sm:$0xff] %v3122_v18  ;;  %4451 = vtanh.f32 %v2978_v58 }
 0x5dc   : > { %3180 = vst.msk [vmem:[%s5509_s21 + $0xf8] sm:$0xf] %vm3147_vm7, %v3123_v10  ;;  %4453 = vtanh.f32 %v2893_v60 }
 0x5df   : > { %v2936_v33 = vpop.f32.mrf.mxu2 }
 0x5e0   : > { %v4450_v45 = vpop.eup %4449  ;;  %v2937_v54 = vadd.f32 %v2936_v33, %v5604_v2  ;;  %v2980_v61 = vpop.f32.mrf.mxu3 }
 0x5e1   : > { %v4452_v62 = vpop.eup %4451  ;;  %v3126_v31 = vpack.c.bf16 %v4450_v45, %v4448_v41  ;;  %v2981_v34 = vadd.f32 %v2980_v61, %v5608_v4  ;;  %v2894_v49 = vpop.f32.mrf.mxu1 }
 0x5e2   : > { %v3127_v15 = vpack.c.bf16 %v4452_v62, %v4452_v62  ;;  %4455 = vtanh.f32 %v2937_v54  ;;  %v2895_v7 = vadd.f32 %v2894_v49, %v5599_v1  ;;  %v4454_v56 = vpop.eup %4453 }
 0x5e3   : > { %3183 = vst [vmem:[%s5509_s21 + $0x10c] sm:$0xff] %v3126_v31  ;;  %4457 = vtanh.f32 %v2981_v34 }
 0x5e4   : > { %3184 = vst.msk [vmem:[%s5509_s21 + $0x114] sm:$0xf] %vm3147_vm7, %v3127_v15  ;;  %4459 = vtanh.f32 %v2895_v7 }
 0x5e7   : > { %v2938_v5 = vpop.f32.mrf.mxu2 }
 0x5e8   : > { %v4456_v19 = vpop.eup %4455  ;;  %v2939_v28 = vadd.f32 %v2938_v5, %v5604_v2  ;;  %v2982_v6 = vpop.f32.mrf.mxu3 }
 0x5e9   : > { %v4458_v42 = vpop.eup %4457  ;;  %v3130_v8 = vpack.c.bf16 %v4456_v19, %v4454_v56  ;;  %v2983_v9 = vadd.f32 %v2982_v6, %v5608_v4  ;;  %v2897_v29 = vpop.f32.mrf.mxu1 }
 0x5ea   : > { %v3131_v32 = vpack.c.bf16 %v4458_v42, %v4458_v42  ;;  %4461 = vtanh.f32 %v2939_v28  ;;  %v2898_v16 = vadd.f32 %v2897_v29, %v5599_v1  ;;  %v4460_v0 = vpop.eup %4459 }
 0x5eb   : > { %3187 = vst [vmem:[%s5509_s21 + $0x128] sm:$0xff] %v3130_v8  ;;  %4463 = vtanh.f32 %v2983_v9 }
 0x5ec   : > { %3188 = vst.msk [vmem:[%s5509_s21 + $0x130] sm:$0xf] %vm3147_vm7, %v3131_v32  ;;  %4465 = vtanh.f32 %v2898_v16 }
 0x5ef   : > { %v2941_v53 = vpop.f32.mrf.mxu2 }
 0x5f0   : > { %v4462_v30 = vpop.eup %4461  ;;  %v2942_v27 = vadd.f32 %v2941_v53, %v5604_v2  ;;  %v2985_v20 = vpop.f32.mrf.mxu3 }
 0x5f1   : > { %v4464_v21 = vpop.eup %4463  ;;  %v3134_v3 = vpack.c.bf16 %v4462_v30, %v4460_v0  ;;  %v2986_v23 = vadd.f32 %v2985_v20, %v5608_v4  ;;  %v2899_v24 = vpop.f32.mrf.mxu1 }
 0x5f2   : > { %v3135_v14 = vpack.c.bf16 %v4464_v21, %v4464_v21  ;;  %4467 = vtanh.f32 %v2942_v27  ;;  %v2900_v25 = vadd.f32 %v2899_v24, %v5599_v1  ;;  %v4466_v17 = vpop.eup %4465 }
 0x5f3   : > { %3191 = vst [vmem:[%s5509_s21 + $0x144] sm:$0xff] %v3134_v3  ;;  %4469 = vtanh.f32 %v2986_v23 }
 0x5f4   : > { %3192 = vst.msk [vmem:[%s5509_s21 + $0x14c] sm:$0xf] %vm3147_vm7, %v3135_v14  ;;  %4471 = vtanh.f32 %v2900_v25 }
 0x5f7   : > { %v2943_v22 = vpop.f32.mrf.mxu2 }
 0x5f8   : > { %v4468_v26 = vpop.eup %4467  ;;  %v2944_v35 = vadd.f32 %v2943_v22, %v5604_v2  ;;  %v2987_v36 = vpop.f32.mrf.mxu3 }
 0x5f9   : > { %v4470_v55 = vpop.eup %4469  ;;  %v3138_v37 = vpack.c.bf16 %v4468_v26, %v4466_v17  ;;  %v2988_v38 = vadd.f32 %v2987_v36, %v5608_v4 }
 0x5fa   : > { %v3139_v12 = vpack.c.bf16 %v4470_v55, %v4470_v55  ;;  %4473 = vtanh.f32 %v2944_v35  ;;  %v4472_v1 = vpop.eup %4471 }
 0x5fb   : > { %3195 = vst [vmem:[%s5509_s21 + $0x160] sm:$0xff] %v3138_v37  ;;  %4475 = vtanh.f32 %v2988_v38 }
 0x5fc   : > { %3196 = vst.msk [vmem:[%s5509_s21 + $0x168] sm:$0xf] %vm3147_vm7, %v3139_v12 }
 0x600   : > { %v4474_v39 = vpop.eup %4473  ;;  %3208 = sbr.rel (!%p4721_p5) target bundleno = 1577 (0x629), region = 96 }
 0x601   : > { %v4476_v63 = vpop.eup %4475  ;;  %v3142_v40 = vpack.c.bf16 %v4474_v39, %v4472_v1 }
 0x602   : > { %v3143_v2 = vpack.c.bf16 %v4476_v63, %v4476_v63 }
 0x603   : > { %3199 = vst [vmem:[%s5509_s21 + $0x17c] sm:$0xff] %v3142_v40 }
 0x604   : > { %3200 = vst.msk [vmem:[%s5509_s21 + $0x184] sm:$0xf] %vm3147_vm7, %v3143_v2 }
 0x605   : > { %s5801_s2 = smov (!%p3211_p0, %s3210_s2), 14 }
 0x606   : > { %s4038_s29 = smul.u32 28, %s5801_s2 }
 0x608   : > { %s3215_s23 = ssub.s32 392, %s4038_s29 }
 0x609   : > { %s3216_s18 = sshll.u32 %s3215_s23, 4 }
 0x60a   : > { %3217 = vsyncadd %s5697_s22, %s3216_s18  ;;  %p5703_p1 = scmp.ne.s32.totalorder %s4038_s29, 0  ;;  %s4234_s30 = smul.u32 392, %s4704_s28 }
 0x60b   : > { %s3223_s3 = sshll.u32 %s5509_s21, 4  ;;  %s5709_s1 = smul.u32 448, %s5801_s2  ;;  %s5714_s3 = int_to_ptr.vmem [resolvable:$true] %s3223_s3 }
 0x60c   : > { %s3221_s26 = scalar_lea.hbm %s5772_s17, %s4234_s30  ;;  %s4507_s29 = sshra.s32 %s5714_s3, 4  ;;  %s4508_s29 = int_to_ptr.vmem [resolvable:$true] %s4507_s29 }
 0x60d   : > { %s3225_s23 = sshll.u32 %s3221_s26, 4  ;;  %s4509_s18 = sshrl.u32 %s5709_s1, 4  ;;  %s5716_s23 = int_to_ptr.hbm [resolvable:$true] %s3225_s23 }
 0x60e   : > { %s4545_s28 = sshll.u32 %s4509_s18, 4  ;;  %s4512_s21 = sadd.s32 1, %s4509_s18 }
 0x60f   : > { %p4511_p2 = scmp.ne.s32.totalorder %s4545_s28, %s5709_s1  ;;  %s4590_s5 = smov [#allocation5]  }
 0x610   : > { %s4518_s30 = scalar_lea.vmem %s4590_s5, 784 }
 0x611   : > { %s5803_s21 = smov (!%p4511_p2, %s4512_s21), %s4509_s18 }
 0x612   : > { %s4514_s2 = scalar_lea.vmem %s4508_s29, %s5803_s21 }
 0x613   : > { %p4515_p3 = scmp.ne.s32.totalorder %s4508_s29, %s4514_s2  ;;  %p4520_p7 = scmp.lt.s32.totalorder %s4518_s30, %s4514_s2 }
 0x615   : > { %p4516_p4 = pnand %p4515_p3, %p5703_p1 }
 0x617   : > { %p4517_p5 = pneg %p4516_p4 }
 0x619   : > { %p4522_p8 = pnand %p4520_p7, %p4517_p5 }
 0x61b   : > { %4525 = shalt.err (!%p4522_p8)
}
 0x61c   : > { %s4526_s4 = sshra.s32 %s5716_s23, 4  ;;  %s4537_s29 = scalar_lea.hbm %s5772_s17, 700  ;;  %s4527_s4 = int_to_ptr.hbm [resolvable:$true] %s4526_s4 }
 0x61d   : > { %s4533_s26 = scalar_lea.hbm %s4527_s4, %s5803_s21  ;;  %p4538_p12 = scmp.lt.s32.totalorder %s4527_s4, %s5772_s17 }
 0x61e   : > { %p4534_p9 = scmp.ne.s32.totalorder %s4527_s4, %s4533_s26  ;;  %p4539_p13 = scmp.lt.s32.totalorder %s4537_s29, %s4533_s26 }
 0x620   : > { %p4535_p10 = pnand %p4534_p9, %p5703_p1  ;;  %p4540_p0 = por %p4539_p13, %p4538_p12 }
 0x622   : > { %p4536_p11 = pneg %p4535_p10 }
 0x624   : > { %p4541_p2 = pnand %p4540_p0, %p4536_p11 }
 0x626   : > { %4544 = shalt.err (!%p4541_p2)
}
 0x627   : > { %s4591_s2 = smov 448   ;;  %s4592_s21 = smov 28  }
 0x628   : > { %3231 = dma.vmem_to_hbm [thread:$0]  (%p5703_p1), %s5714_s3, %s5709_s1, %s5716_s23, %s5697_s22, %s4591_s2, %s4591_s2, %s4592_s21  }
 0x629 PF: > { %p4235_p3 = scmp.ge.s32.totalorder %s4584_s27, 2  ;;  %s3240_s6 = sand.u32 1, %s4572_s24  }
 0x62a   : > { %s3241_s7 = scalar_lea.sflag [#allocation4], %s3240_s6 }
 0x62b   : > { %p4229_p4 = pnand %p4235_p3, %p4725_p6 }
 0x62d   : > { %p4230_p5 = pneg %p4229_p4 }
 0x62f   : > { %4567 = dma.done.wait (%p4230_p5), %s3241_s7, 6272  }
 0x630   : > { %4569 = vsyncadd (%p4230_p5), %s3241_s7, 4294961024  ;;  %s5795_s5 = sld [smem:[#allocation8_spill]]  ;;  %p28_p7 = scmp.ge.s32.totalorder %s4708_s0, 4  }
 0x631   : > { %s5796_s26 = sld [smem:[#allocation9_spill]]  ;;  %s5797_s24 = smov %s4576_s25 }
 0x632   : > { %s5799_s27 = smov %s4708_s0  ;;  %30 = sbr.rel (!%p28_p7) target bundleno = 13 (0xd), region = 128 }
 0x636   : > { %s5798_s25 = smov %s5795_s5 }
 0x637   :  { %3247 = vsyncpa [#allocation3], 1 }
 0x638   :  { %3249 = vsyncpa [#allocation3 + $0x1], 1 }
 0x639   :  { %3250 = vsyncpa [#allocation4], 1 }
 0x63a   :  { %3252 = vsyncpa [#allocation4 + $0x1], 1 }

</bundles_post_ra>
